<compile_context>
chip_gen: v5e
topology: v5e:2x2
jax: 0.10.0
libtpu: 0.0.40
codegen_flags: <defaults>
</compile_context>

<pallas_src>
import functools

import jax
import jax.numpy as jnp
from jax import lax
from jax.experimental import pallas as pl
from jax.experimental.pallas import tpu as pltpu

BN_EPS = 1e-5
LANE = 128  # TPU vreg lane width


def _round_up(x, m):
    return (x + m - 1) // m * m


def _pick_block(n, h, w, cp):
    """Images per grid step: keep >= 2 grid steps and a bounded hidden scratch."""
    for nb in (8, 4, 2):
        if n % nb == 0 and n // nb >= 2 and nb * h * w * cp * 4 <= (4 << 20):
            return nb
    return 1


# --------------------------------------------------------------------------- fused kernel
def _bottleneck_kernel(NB, H, W, stride, connect, cdt, *args):
    """NB images per grid step; hidden activation stays in VMEM.

    refs (in order):
      x_ref   : (NB, H*W, Cin)   input rows (NHWC)
      xr_ref  : (NB, Cin, H*W)   channels-major input (only when connect)
      w1_ref  : (Cin, Cp)        1x1 expand weight, BN1 scale folded
      b1/a1   : (1, Cp)          BN1 bias / PReLU1 slope
      wd_ref  : (9, Cp)          depthwise weight (kh*3+kw, c), BN2 scale folded
      b2/a2   : (1, Cp)          BN2 bias / PReLU2 slope
      w3_ref  : (oup, Cp)        1x1 project weight (transposed), BN3 folded
      b3_ref  : (oup, 1)         BN3 bias
      o_ref   : (NB, oup, Ho*Wo) output (NCHW-native, lane-dense last dim)
      hid_ref : (NB*H, W, Cp)    f32 VMEM scratch: raw stage-1 matmul output
      y2_ref  : (Ho, W, Cp)      f32 VMEM scratch: depthwise output (full width)
    """
    if connect:
        (x_ref, xr_ref, w1_ref, b1_ref, a1_ref, wd_ref, b2_ref, a2_ref,
         w3_ref, b3_ref, o_ref, hid_ref, y2_ref) = args
    else:
        (x_ref, w1_ref, b1_ref, a1_ref, wd_ref, b2_ref, a2_ref,
         w3_ref, b3_ref, o_ref, hid_ref, y2_ref) = args
        xr_ref = None

    f32 = jnp.float32
    Cin = x_ref.shape[2]
    Cp = w1_ref.shape[1]
    M = H * W
    Ho = (H - 1) // stride + 1
    Wo = (W - 1) // stride + 1
    Mo = Ho * Wo

    # ---- stage 1: one big 1x1 expand matmul for all NB images (raw result;
    # BN1 bias + PReLU1 are fused into the row loads of stage 2). -------------
    x_all = x_ref[...].reshape(NB * M, Cin).astype(cdt)
    h_raw = jnp.dot(x_all, w1_ref[...], preferred_element_type=f32)   # (NB*M, Cp)
    hid_ref[...] = h_raw.reshape(NB * H, W, Cp)

    b1 = b1_ref[...]
    a1 = a1_ref[...]
    b2 = b2_ref[...]
    a2 = a2_ref[...]
    wd = wd_ref[...]                                   # (9, Cp)
    zrow = jnp.zeros((1, Cp), f32)

    for i in range(NB):                                # static loop over images
        # ---- stage 2: 3x3 depthwise, one output row at a time ---------------
        def row_body(ho, carry):
            acc = jnp.zeros((W, Cp), f32)
            for kh in range(3):                        # static taps
                r = ho * stride + (kh - 1)
                row = hid_ref[i * H + jnp.clip(r, 0, H - 1)]     # (W, Cp)
                row = row + b1
                row = jnp.where(row >= 0.0, row, row * a1)       # PReLU1
                if kh != 1:                            # boundary rows -> zero
                    keep = jnp.logical_and(r >= 0, r < H).astype(f32)
                    row = row * keep
                left = jnp.concatenate([zrow, row[:W - 1]], axis=0)   # x[w-1]
                right = jnp.concatenate([row[1:], zrow], axis=0)      # x[w+1]
                acc = (acc + left * wd[3 * kh + 0]
                       + row * wd[3 * kh + 1]
                       + right * wd[3 * kh + 2])
            acc = acc + b2
            acc = jnp.where(acc >= 0.0, acc, acc * a2)                # PReLU2
            y2_ref[ho] = acc
            return carry

        lax.fori_loop(0, Ho, row_body, 0)

        # ---- stage 3: 1x1 project, computed transposed -> (oup, Mo) ----------
        if stride == 1:
            y2 = y2_ref[...]                                          # (Ho, W, Cp)
        else:
            # decimate the W axis ONCE per image (not once per tap)
            y2 = y2_ref[:, pl.ds(0, Wo, stride=stride), :]            # (Ho, Wo, Cp)
        y2 = y2.reshape(Mo, Cp).astype(cdt)
        y3 = lax.dot_general(w3_ref[...], y2,
                             dimension_numbers=(((1,), (1,)), ((), ())),
                             preferred_element_type=f32)              # (oup, Mo)
        y3 = y3 + b3_ref[...]
        if connect:                                    # stride==1, Cin==oup
            y3 = y3 + xr_ref[i].astype(f32)            # residual, already (Cin, M)
        o_ref[i] = y3.astype(o_ref.dtype)


# --------------------------------------------------------------------------- helpers
def fold_bn(gamma, beta, mean, var):
    scale = gamma / jnp.sqrt(var + BN_EPS)
    bias = beta - mean * scale
    return scale, bias


def init_bottleneck_params(key, inp, oup, expansion):
    hidden = inp * expansion
    ks = jax.random.split(key, 12)

    def bn(k, c):
        k1, k2, k3, k4 = jax.random.split(k, 4)
        gamma = 1.0 + 0.1 * jax.random.normal(k1, (c,), jnp.float32)
        beta = 0.1 * jax.random.normal(k2, (c,), jnp.float32)
        mean = 0.1 * jax.random.normal(k3, (c,), jnp.float32)
        var = jax.random.uniform(k4, (c,), jnp.float32, 0.5, 1.5)
        return gamma, beta, mean, var

    return dict(
        w1_oihw=0.2 * jax.random.normal(ks[0], (hidden, inp, 1, 1), jnp.float32),
        bn1=bn(ks[1], hidden),
        prelu1=jnp.full((hidden,), 0.25, jnp.float32),
        wd_oihw=0.2 * jax.random.normal(ks[2], (hidden, 1, 3, 3), jnp.float32),
        bn2=bn(ks[3], hidden),
        prelu2=jnp.full((hidden,), 0.25, jnp.float32),
        w3_oihw=0.2 * jax.random.normal(ks[4], (oup, hidden, 1, 1), jnp.float32),
        bn3=bn(ks[5], oup),
    )


# --------------------------------------------------------------------------- wrapper
def bottleneck_forward_pallas(x_nchw, p, inp, oup, stride, expansion,
                              compute_dtype=jnp.float32):
    """Fused Pallas implementation of Bottleneck.forward. Input/output: NCHW."""
    connect = (stride == 1) and (inp == oup)
    hidden = inp * expansion
    N, C, H, W = x_nchw.shape
    assert C == inp
    Ho = (H - 1) // stride + 1
    Wo = (W - 1) // stride + 1
    M, Mo = H * W, Ho * Wo
    Cp = max(LANE, _round_up(hidden, LANE))            # lane-dense padded hidden
    pad_c = Cp - hidden
    cdt = compute_dtype

    # fold BN scales into the weights; zero-pad the hidden channel dimension.
    s1, b1 = fold_bn(*p["bn1"])
    s2, b2 = fold_bn(*p["bn2"])
    s3, b3 = fold_bn(*p["bn3"])
    w1 = p["w1_oihw"][:, :, 0, 0].T * s1[None, :]               # (inp, hidden)
    wd9 = (p["wd_oihw"][:, 0] * s2[:, None, None]).reshape(hidden, 9).T  # (9, hidden)
    w3t = p["w3_oihw"][:, :, 0, 0] * s3[:, None]                # (oup, hidden)

    w1p = jnp.pad(w1, ((0, 0), (0, pad_c))).astype(cdt)         # (inp, Cp)
    wdp = jnp.pad(wd9, ((0, 0), (0, pad_c)))                    # (9, Cp) f32
    w3p = jnp.pad(w3t, ((0, 0), (0, pad_c))).astype(cdt)        # (oup, Cp)
    b1p = jnp.pad(b1, (0, pad_c)).reshape(1, Cp)
    a1p = jnp.pad(p["prelu1"], (0, pad_c)).reshape(1, Cp)
    b2p = jnp.pad(b2, (0, pad_c)).reshape(1, Cp)
    a2p = jnp.pad(p["prelu2"], (0, pad_c)).reshape(1, Cp)
    b3r = b3.reshape(oup, 1)

    NB = _pick_block(N, H, W, Cp)
    grid = (N // NB,)

    # layout glue (outside the kernel; output side needs only a reshape).
    x_rows = jnp.transpose(x_nchw, (0, 2, 3, 1)).reshape(N, M, inp)

    args = [x_rows]
    in_specs = [pl.BlockSpec((NB, M, inp), lambda b: (b, 0, 0))]
    if connect:
        x_cm = x_nchw.reshape(N, inp, M)                # NCHW-native, for residual
        args.append(x_cm)
        in_specs.append(pl.BlockSpec((NB, inp, M), lambda b: (b, 0, 0)))
    args += [w1p, b1p, a1p, wdp, b2p, a2p, w3p, b3r]
    in_specs += [
        pl.BlockSpec((inp, Cp), lambda b: (0, 0)),      # w1  (BN1 folded)
        pl.BlockSpec((1, Cp), lambda b: (0, 0)),        # b1
        pl.BlockSpec((1, Cp), lambda b: (0, 0)),        # prelu1
        pl.BlockSpec((9, Cp), lambda b: (0, 0)),        # dw weight (BN2 folded)
        pl.BlockSpec((1, Cp), lambda b: (0, 0)),        # b2
        pl.BlockSpec((1, Cp), lambda b: (0, 0)),        # prelu2
        pl.BlockSpec((oup, Cp), lambda b: (0, 0)),      # w3^T (BN3 folded)
        pl.BlockSpec((oup, 1), lambda b: (0, 0)),       # b3
    ]

    kernel = functools.partial(_bottleneck_kernel, NB, H, W, stride, connect, cdt)

    flops = 2 * N * (M * inp * Cp + 9 * Ho * W * Cp + Mo * Cp * oup)
    bytes_accessed = int(
        4 * (N * M * inp * (2 if connect else 1) + N * Mo * oup)
        + (inp * Cp + oup * Cp) * jnp.dtype(cdt).itemsize
        + 4 * (9 * Cp + 4 * Cp + oup))

    out = pl.pallas_call(
        kernel,
        out_shape=jax.ShapeDtypeStruct((N, oup, Mo), x_nchw.dtype),
        grid=grid,
        in_specs=in_specs,
        out_specs=pl.BlockSpec((NB, oup, Mo), lambda b: (b, 0, 0)),
        scratch_shapes=[pltpu.VMEM((NB * H, W, Cp), jnp.float32),
                        pltpu.VMEM((Ho, W, Cp), jnp.float32)],
        compiler_params=pltpu.CompilerParams(
            dimension_semantics=("parallel",)),
        cost_estimate=pl.CostEstimate(flops=flops, transcendentals=0,
                                      bytes_accessed=bytes_accessed),
    )(*args)

    return out.reshape(N, oup, Ho, Wo)                  # NCHW, no transpose


# --------------------------------------------------------------------------- pure-JAX reference (mirrors PyTorch)
def bottleneck_forward_ref(x_nchw, p, inp, oup, stride, expansion):
    connect = (stride == 1) and (inp == oup)
    hidden = inp * expansion
    dn = ("NCHW", "OIHW", "NCHW")
    prec = lax.Precision.HIGHEST

    def bn_apply(x, bnp):
        gamma, beta, mean, var = bnp
        sh = (1, -1, 1, 1)
        return (x - mean.reshape(sh)) / jnp.sqrt(var.reshape(sh) + BN_EPS) \
            * gamma.reshape(sh) + beta.reshape(sh)

    def prelu(x, a):
        a = a.reshape(1, -1, 1, 1)
        return jnp.where(x >= 0, x, a * x)

    y = lax.conv_general_dilated(x_nchw, p["w1_oihw"], (1, 1), "VALID",
                                 dimension_numbers=dn, precision=prec)
    y = prelu(bn_apply(y, p["bn1"]), p["prelu1"])
    y = lax.conv_general_dilated(y, p["wd_oihw"], (stride, stride),
                                 [(1, 1), (1, 1)], dimension_numbers=dn,
                                 feature_group_count=hidden, precision=prec)
    y = prelu(bn_apply(y, p["bn2"]), p["prelu2"])
    y = lax.conv_general_dilated(y, p["w3_oihw"], (1, 1), "VALID",
                                 dimension_numbers=dn, precision=prec)
    y = bn_apply(y, p["bn3"])
    return x_nchw + y if connect else y


# --------------------------------------------------------------------------- main
if __name__ == "__main__":
    key = jax.random.PRNGKey(0)
    k_x1, k_x2, k_p1, k_p2 = jax.random.split(key, 4)

    fwd = jax.jit(bottleneck_forward_pallas, static_argnums=(2, 3, 4, 5, 6))

    # case 1: residual path (stride=1, inp==oup), batch-blocked (NB=2, grid=2)
    N, inp, H, W = 4, 4, 16, 16
    oup, stride, expansion = 4, 1, 2
    x1 = jax.random.normal(k_x1, (N, inp, H, W), jnp.float32)
    params1 = init_bottleneck_params(k_p1, inp, oup, expansion)
    out1 = jax.block_until_ready(
        fwd(x1, params1, inp, oup, stride, expansion, jnp.float32))
    ref1 = bottleneck_forward_ref(x1, params1, inp, oup, stride, expansion)
    assert out1.shape == ref1.shape == (N, oup, H, W)
    err1 = float(jnp.max(jnp.abs(out1 - ref1)))
    assert err1 < 5e-4, f"case1 err {err1}"

    # case 2: stride 2, no residual, inp != oup (shape from the spec: 2x4x16x16)
    N2, oup2, stride2 = 2, 6, 2
    x2 = jax.random.normal(k_x2, (N2, inp, H, W), jnp.float32)
    params2 = init_bottleneck_params(k_p2, inp, oup2, expansion)
    out2 = jax.block_until_ready(
        fwd(x2, params2, inp, oup2, stride2, expansion, jnp.float32))
    ref2 = bottleneck_forward_ref(x2, params2, inp, oup2, stride2, expansion)
    assert out2.shape == ref2.shape == (N2, oup2, H // 2, W // 2)
    err2 = float(jnp.max(jnp.abs(out2 - ref2)))
    assert err2 < 5e-4, f"case2 err {err2}"

    # case 3: bf16 MXU operands (v6e/v7x path), f32 accumulation
    out3 = jax.block_until_ready(
        fwd(x1, params1, inp, oup, stride, expansion, jnp.bfloat16))
    err3 = float(jnp.max(jnp.abs(out3.astype(jnp.float32) - ref1)))
    assert err3 < 2e-1, f"case3 err {err3}"

    print("KERNEL_OK")
</pallas_src>

<mosaic_0001>
module attributes {stable_mosaic.version = 11 : i64} {
  func.func @_bottleneck_kernel(%arg0: i32, %arg1: memref<2x256x4xf32, #tpu.memory_space<vmem>>, %arg2: memref<2x4x256xf32, #tpu.memory_space<vmem>>, %arg3: memref<4x128xf32, #tpu.memory_space<vmem>>, %arg4: memref<1x128xf32, #tpu.memory_space<vmem>>, %arg5: memref<1x128xf32, #tpu.memory_space<vmem>>, %arg6: memref<9x128xf32, #tpu.memory_space<vmem>>, %arg7: memref<1x128xf32, #tpu.memory_space<vmem>>, %arg8: memref<1x128xf32, #tpu.memory_space<vmem>>, %arg9: memref<4x128xf32, #tpu.memory_space<vmem>>, %arg10: memref<4x1xf32, #tpu.memory_space<vmem>>, %arg11: memref<2x4x256xf32, #tpu.memory_space<vmem>>, %arg12: memref<32x16x128xf32, #tpu.memory_space<vmem>>, %arg13: memref<16x16x128xf32, #tpu.memory_space<vmem>>) attributes {dimension_semantics = [#tpu.dimension_semantics<parallel>], iteration_bounds = array<i64: 2>, scalar_prefetch = 0 : i64, scratch_operands = 2 : i64, tpu.core_type = #tpu.core_type<tc>, window_params = [{transform_indices = @transform_0, window_bounds = array<i64: 2, 256, 4>}, {transform_indices = @transform_1, window_bounds = array<i64: 2, 4, 256>}, {pipeline_mode = #tpu.pipeline_mode<synchronous>, transform_indices = @transform_2, window_bounds = array<i64: 4, 128>}, {pipeline_mode = #tpu.pipeline_mode<synchronous>, transform_indices = @transform_3, window_bounds = array<i64: 1, 128>}, {pipeline_mode = #tpu.pipeline_mode<synchronous>, transform_indices = @transform_4, window_bounds = array<i64: 1, 128>}, {pipeline_mode = #tpu.pipeline_mode<synchronous>, transform_indices = @transform_5, window_bounds = array<i64: 9, 128>}, {pipeline_mode = #tpu.pipeline_mode<synchronous>, transform_indices = @transform_6, window_bounds = array<i64: 1, 128>}, {pipeline_mode = #tpu.pipeline_mode<synchronous>, transform_indices = @transform_7, window_bounds = array<i64: 1, 128>}, {pipeline_mode = #tpu.pipeline_mode<synchronous>, transform_indices = @transform_8, window_bounds = array<i64: 4, 128>}, {pipeline_mode = #tpu.pipeline_mode<synchronous>, transform_indices = @transform_9, window_bounds = array<i64: 4, 1>}, {transform_indices = @transform_10, window_bounds = array<i64: 2, 4, 256>}]} {
    %c0 = arith.constant 0 : index
    %c0_0 = arith.constant 0 : index
    %c0_1 = arith.constant 0 : index
    %0 = vector.load %arg1[%c0, %c0_0, %c0_1] : memref<2x256x4xf32, #tpu.memory_space<vmem>>, vector<2x256x4xf32>
    %1 = vector.shape_cast %0 : vector<2x256x4xf32> to vector<512x4xf32>
    %c0_2 = arith.constant 0 : index
    %c0_3 = arith.constant 0 : index
    %2 = vector.load %arg3[%c0_2, %c0_3] : memref<4x128xf32, #tpu.memory_space<vmem>>, vector<4x128xf32>
    %cst = arith.constant dense<0.000000e+00> : vector<512x128xf32>
    %3 = tpu.matmul %1, %2, %cst {dimension_numbers = #tpu.dot_dimension_numbers<[1], [0], [0], [1], [0, 0, 1, 1], [], []>} : vector<512x4xf32>, vector<4x128xf32>, vector<512x128xf32> -> vector<512x128xf32>
    %4 = vector.shape_cast %3 : vector<512x128xf32> to vector<32x16x128xf32>
    %c0_4 = arith.constant 0 : index
    %c0_5 = arith.constant 0 : index
    %c0_6 = arith.constant 0 : index
    %5 = vector.load %arg12[%c0_4, %c0_5, %c0_6] : memref<32x16x128xf32, #tpu.memory_space<vmem>>, vector<32x16x128xf32>
    tpu.vector_store %arg12[%c0_4, %c0_5, %c0_6], %4 {strides = array<i32>} : memref<32x16x128xf32, #tpu.memory_space<vmem>>, vector<32x16x128xf32>,
    %c0_7 = arith.constant 0 : index
    %c0_8 = arith.constant 0 : index
    %6 = vector.load %arg4[%c0_7, %c0_8] : memref<1x128xf32, #tpu.memory_space<vmem>>, vector<1x128xf32>
    %c0_9 = arith.constant 0 : index
    %c0_10 = arith.constant 0 : index
    %7 = vector.load %arg5[%c0_9, %c0_10] : memref<1x128xf32, #tpu.memory_space<vmem>>, vector<1x128xf32>
    %c0_11 = arith.constant 0 : index
    %c0_12 = arith.constant 0 : index
    %8 = vector.load %arg7[%c0_11, %c0_12] : memref<1x128xf32, #tpu.memory_space<vmem>>, vector<1x128xf32>
    %c0_13 = arith.constant 0 : index
    %c0_14 = arith.constant 0 : index
    %9 = vector.load %arg8[%c0_13, %c0_14] : memref<1x128xf32, #tpu.memory_space<vmem>>, vector<1x128xf32>
    %c0_15 = arith.constant 0 : index
    %c0_16 = arith.constant 0 : index
    %10 = vector.load %arg6[%c0_15, %c0_16] : memref<9x128xf32, #tpu.memory_space<vmem>>, vector<9x128xf32>
    %cst_17 = arith.constant 0.000000e+00 : f32
    %11 = vector.broadcast %cst_17 : f32 to vector<1x128xf32>
    %c0_i32 = arith.constant 0 : i32
    %c16_i32 = arith.constant 16 : i32
    %12 = arith.addi %c0_i32, %c16_i32 : i32
    %c1_i32 = arith.constant 1 : i32
    scf.for %arg14 = %c0_i32 to %12 step %c1_i32  : i32 {
      %cst_50 = arith.constant 0.000000e+00 : f32
      %40 = vector.broadcast %cst_50 : f32 to vector<16x128xf32>
      %c1_i32_51 = arith.constant 1 : i32
      %41 = arith.muli %arg14, %c1_i32_51 : i32
      %c-1_i32 = arith.constant -1 : i32
      %42 = arith.addi %41, %c-1_i32 : i32
      %c0_i32_52 = arith.constant 0 : i32
      %c15_i32 = arith.constant 15 : i32
      %43 = arith.maxsi %c0_i32_52, %42 : i32
      %44 = arith.minsi %c15_i32, %43 : i32
      %c0_i32_53 = arith.constant 0 : i32
      %45 = arith.addi %c0_i32_53, %44 : i32
      %46 = arith.index_cast %45 : i32 to index
      %c0_54 = arith.constant 0 : index
      %c0_55 = arith.constant 0 : index
      %47 = vector.load %arg12[%46, %c0_54, %c0_55] : memref<32x16x128xf32, #tpu.memory_space<vmem>>, vector<1x16x128xf32>
      %48 = vector.shape_cast %47 : vector<1x16x128xf32> to vector<16x128xf32>
      %49 = vector.broadcast %6 : vector<1x128xf32> to vector<16x128xf32>
      %50 = arith.addf %48, %49 : vector<16x128xf32>
      %cst_56 = arith.constant 0.000000e+00 : f32
      %51 = vector.broadcast %cst_56 : f32 to vector<16x128xf32>
      %52 = arith.cmpf oge, %50, %51 : vector<16x128xf32>
      %53 = vector.broadcast %7 : vector<1x128xf32> to vector<16x128xf32>
      %54 = arith.mulf %50, %53 : vector<16x128xf32>
      %55 = arith.select %52, %50, %54 : vector<16x128xi1>, vector<16x128xf32>
      %c0_i32_57 = arith.constant 0 : i32
      %56 = arith.cmpi sge, %42, %c0_i32_57 : i32
      %c16_i32_58 = arith.constant 16 : i32
      %57 = arith.cmpi slt, %42, %c16_i32_58 : i32
      %58 = arith.andi %56, %57 : i1
      %59 = arith.extui %58 : i1 to i32
      %60 = arith.sitofp %59 : i32 to f32
      %61 = vector.broadcast %60 : f32 to vector<16x128xf32>
      %62 = arith.mulf %55, %61 : vector<16x128xf32>
      %63 = vector.extract_strided_slice %62 {offsets = [0, 0], sizes = [15, 128], strides = [1, 1]} : vector<16x128xf32> to vector<15x128xf32>
      %64 = tpu.concatenate %11, %63 in 0 : vector<1x128xf32>, vector<15x128xf32> -> vector<16x128xf32>
      %65 = vector.extract_strided_slice %62 {offsets = [1, 0], sizes = [15, 128], strides = [1, 1]} : vector<16x128xf32> to vector<15x128xf32>
      %66 = tpu.concatenate %65, %11 in 0 : vector<15x128xf32>, vector<1x128xf32> -> vector<16x128xf32>
      %67 = vector.extract_strided_slice %10 {offsets = [0, 0], sizes = [1, 128], strides = [1, 1]} : vector<9x128xf32> to vector<1x128xf32>
      %68 = vector.shape_cast %67 : vector<1x128xf32> to vector<128xf32>
      %69 = vector.shape_cast %68 : vector<128xf32> to vector<1x128xf32>
      %70 = vector.broadcast %69 : vector<1x128xf32> to vector<16x128xf32>
      %71 = arith.mulf %64, %70 : vector<16x128xf32>
      %72 = arith.addf %40, %71 : vector<16x128xf32>
      %73 = vector.extract_strided_slice %10 {offsets = [1, 0], sizes = [1, 128], strides = [1, 1]} : vector<9x128xf32> to vector<1x128xf32>
      %74 = vector.shape_cast %73 : vector<1x128xf32> to vector<128xf32>
      %75 = vector.shape_cast %74 : vector<128xf32> to vector<1x128xf32>
      %76 = vector.broadcast %75 : vector<1x128xf32> to vector<16x128xf32>
      %77 = arith.mulf %62, %76 : vector<16x128xf32>
      %78 = arith.addf %72, %77 : vector<16x128xf32>
      %79 = vector.extract_strided_slice %10 {offsets = [2, 0], sizes = [1, 128], strides = [1, 1]} : vector<9x128xf32> to vector<1x128xf32>
      %80 = vector.shape_cast %79 : vector<1x128xf32> to vector<128xf32>
      %81 = vector.shape_cast %80 : vector<128xf32> to vector<1x128xf32>
      %82 = vector.broadcast %81 : vector<1x128xf32> to vector<16x128xf32>
      %83 = arith.mulf %66, %82 : vector<16x128xf32>
      %84 = arith.addf %78, %83 : vector<16x128xf32>
      %c1_i32_59 = arith.constant 1 : i32
      %85 = arith.muli %arg14, %c1_i32_59 : i32
      %c0_i32_60 = arith.constant 0 : i32
      %86 = arith.addi %85, %c0_i32_60 : i32
      %c0_i32_61 = arith.constant 0 : i32
      %c15_i32_62 = arith.constant 15 : i32
      %87 = arith.maxsi %c0_i32_61, %86 : i32
      %88 = arith.minsi %c15_i32_62, %87 : i32
      %c0_i32_63 = arith.constant 0 : i32
      %89 = arith.addi %c0_i32_63, %88 : i32
      %90 = arith.index_cast %89 : i32 to index
      %c0_64 = arith.constant 0 : index
      %c0_65 = arith.constant 0 : index
      %91 = vector.load %arg12[%90, %c0_64, %c0_65] : memref<32x16x128xf32, #tpu.memory_space<vmem>>, vector<1x16x128xf32>
      %92 = vector.shape_cast %91 : vector<1x16x128xf32> to vector<16x128xf32>
      %93 = vector.broadcast %6 : vector<1x128xf32> to vector<16x128xf32>
      %94 = arith.addf %92, %93 : vector<16x128xf32>
      %cst_66 = arith.constant 0.000000e+00 : f32
      %95 = vector.broadcast %cst_66 : f32 to vector<16x128xf32>
      %96 = arith.cmpf oge, %94, %95 : vector<16x128xf32>
      %97 = vector.broadcast %7 : vector<1x128xf32> to vector<16x128xf32>
      %98 = arith.mulf %94, %97 : vector<16x128xf32>
      %99 = arith.select %96, %94, %98 : vector<16x128xi1>, vector<16x128xf32>
      %100 = vector.extract_strided_slice %99 {offsets = [0, 0], sizes = [15, 128], strides = [1, 1]} : vector<16x128xf32> to vector<15x128xf32>
      %101 = tpu.concatenate %11, %100 in 0 : vector<1x128xf32>, vector<15x128xf32> -> vector<16x128xf32>
      %102 = vector.extract_strided_slice %99 {offsets = [1, 0], sizes = [15, 128], strides = [1, 1]} : vector<16x128xf32> to vector<15x128xf32>
      %103 = tpu.concatenate %102, %11 in 0 : vector<15x128xf32>, vector<1x128xf32> -> vector<16x128xf32>
      %104 = vector.extract_strided_slice %10 {offsets = [3, 0], sizes = [1, 128], strides = [1, 1]} : vector<9x128xf32> to vector<1x128xf32>
      %105 = vector.shape_cast %104 : vector<1x128xf32> to vector<128xf32>
      %106 = vector.shape_cast %105 : vector<128xf32> to vector<1x128xf32>
      %107 = vector.broadcast %106 : vector<1x128xf32> to vector<16x128xf32>
      %108 = arith.mulf %101, %107 : vector<16x128xf32>
      %109 = arith.addf %84, %108 : vector<16x128xf32>
      %110 = vector.extract_strided_slice %10 {offsets = [4, 0], sizes = [1, 128], strides = [1, 1]} : vector<9x128xf32> to vector<1x128xf32>
      %111 = vector.shape_cast %110 : vector<1x128xf32> to vector<128xf32>
      %112 = vector.shape_cast %111 : vector<128xf32> to vector<1x128xf32>
      %113 = vector.broadcast %112 : vector<1x128xf32> to vector<16x128xf32>
      %114 = arith.mulf %99, %113 : vector<16x128xf32>
      %115 = arith.addf %109, %114 : vector<16x128xf32>
      %116 = vector.extract_strided_slice %10 {offsets = [5, 0], sizes = [1, 128], strides = [1, 1]} : vector<9x128xf32> to vector<1x128xf32>
      %117 = vector.shape_cast %116 : vector<1x128xf32> to vector<128xf32>
      %118 = vector.shape_cast %117 : vector<128xf32> to vector<1x128xf32>
      %119 = vector.broadcast %118 : vector<1x128xf32> to vector<16x128xf32>
      %120 = arith.mulf %103, %119 : vector<16x128xf32>
      %121 = arith.addf %115, %120 : vector<16x128xf32>
      %c1_i32_67 = arith.constant 1 : i32
      %122 = arith.muli %arg14, %c1_i32_67 : i32
      %c1_i32_68 = arith.constant 1 : i32
      %123 = arith.addi %122, %c1_i32_68 : i32
      %c0_i32_69 = arith.constant 0 : i32
      %c15_i32_70 = arith.constant 15 : i32
      %124 = arith.maxsi %c0_i32_69, %123 : i32
      %125 = arith.minsi %c15_i32_70, %124 : i32
      %c0_i32_71 = arith.constant 0 : i32
      %126 = arith.addi %c0_i32_71, %125 : i32
      %127 = arith.index_cast %126 : i32 to index
      %c0_72 = arith.constant 0 : index
      %c0_73 = arith.constant 0 : index
      %128 = vector.load %arg12[%127, %c0_72, %c0_73] : memref<32x16x128xf32, #tpu.memory_space<vmem>>, vector<1x16x128xf32>
      %129 = vector.shape_cast %128 : vector<1x16x128xf32> to vector<16x128xf32>
      %130 = vector.broadcast %6 : vector<1x128xf32> to vector<16x128xf32>
      %131 = arith.addf %129, %130 : vector<16x128xf32>
      %cst_74 = arith.constant 0.000000e+00 : f32
      %132 = vector.broadcast %cst_74 : f32 to vector<16x128xf32>
      %133 = arith.cmpf oge, %131, %132 : vector<16x128xf32>
      %134 = vector.broadcast %7 : vector<1x128xf32> to vector<16x128xf32>
      %135 = arith.mulf %131, %134 : vector<16x128xf32>
      %136 = arith.select %133, %131, %135 : vector<16x128xi1>, vector<16x128xf32>
      %c0_i32_75 = arith.constant 0 : i32
      %137 = arith.cmpi sge, %123, %c0_i32_75 : i32
      %c16_i32_76 = arith.constant 16 : i32
      %138 = arith.cmpi slt, %123, %c16_i32_76 : i32
      %139 = arith.andi %137, %138 : i1
      %140 = arith.extui %139 : i1 to i32
      %141 = arith.sitofp %140 : i32 to f32
      %142 = vector.broadcast %141 : f32 to vector<16x128xf32>
      %143 = arith.mulf %136, %142 : vector<16x128xf32>
      %144 = vector.extract_strided_slice %143 {offsets = [0, 0], sizes = [15, 128], strides = [1, 1]} : vector<16x128xf32> to vector<15x128xf32>
      %145 = tpu.concatenate %11, %144 in 0 : vector<1x128xf32>, vector<15x128xf32> -> vector<16x128xf32>
      %146 = vector.extract_strided_slice %143 {offsets = [1, 0], sizes = [15, 128], strides = [1, 1]} : vector<16x128xf32> to vector<15x128xf32>
      %147 = tpu.concatenate %146, %11 in 0 : vector<15x128xf32>, vector<1x128xf32> -> vector<16x128xf32>
      %148 = vector.extract_strided_slice %10 {offsets = [6, 0], sizes = [1, 128], strides = [1, 1]} : vector<9x128xf32> to vector<1x128xf32>
      %149 = vector.shape_cast %148 : vector<1x128xf32> to vector<128xf32>
      %150 = vector.shape_cast %149 : vector<128xf32> to vector<1x128xf32>
      %151 = vector.broadcast %150 : vector<1x128xf32> to vector<16x128xf32>
      %152 = arith.mulf %145, %151 : vector<16x128xf32>
      %153 = arith.addf %121, %152 : vector<16x128xf32>
      %154 = vector.extract_strided_slice %10 {offsets = [7, 0], sizes = [1, 128], strides = [1, 1]} : vector<9x128xf32> to vector<1x128xf32>
      %155 = vector.shape_cast %154 : vector<1x128xf32> to vector<128xf32>
      %156 = vector.shape_cast %155 : vector<128xf32> to vector<1x128xf32>
      %157 = vector.broadcast %156 : vector<1x128xf32> to vector<16x128xf32>
      %158 = arith.mulf %143, %157 : vector<16x128xf32>
      %159 = arith.addf %153, %158 : vector<16x128xf32>
      %160 = vector.extract_strided_slice %10 {offsets = [8, 0], sizes = [1, 128], strides = [1, 1]} : vector<9x128xf32> to vector<1x128xf32>
      %161 = vector.shape_cast %160 : vector<1x128xf32> to vector<128xf32>
      %162 = vector.shape_cast %161 : vector<128xf32> to vector<1x128xf32>
      %163 = vector.broadcast %162 : vector<1x128xf32> to vector<16x128xf32>
      %164 = arith.mulf %147, %163 : vector<16x128xf32>
      %165 = arith.addf %159, %164 : vector<16x128xf32>
      %166 = vector.broadcast %8 : vector<1x128xf32> to vector<16x128xf32>
      %167 = arith.addf %165, %166 : vector<16x128xf32>
      %cst_77 = arith.constant 0.000000e+00 : f32
      %168 = vector.broadcast %cst_77 : f32 to vector<16x128xf32>
      %169 = arith.cmpf oge, %167, %168 : vector<16x128xf32>
      %170 = vector.broadcast %9 : vector<1x128xf32> to vector<16x128xf32>
      %171 = arith.mulf %167, %170 : vector<16x128xf32>
      %172 = arith.select %169, %167, %171 : vector<16x128xi1>, vector<16x128xf32>
      %173 = arith.index_cast %arg14 : i32 to index
      %c0_78 = arith.constant 0 : index
      %c0_79 = arith.constant 0 : index
      %174 = vector.load %arg13[%173, %c0_78, %c0_79] : memref<16x16x128xf32, #tpu.memory_space<vmem>>, vector<1x16x128xf32>
      %175 = vector.shape_cast %174 : vector<1x16x128xf32> to vector<16x128xf32>
      %176 = vector.shape_cast %172 : vector<16x128xf32> to vector<1x16x128xf32>
      tpu.vector_store %arg13[%173, %c0_78, %c0_79], %176 {strides = array<i32>} : memref<16x16x128xf32, #tpu.memory_space<vmem>>, vector<1x16x128xf32>,
    }
    %c16_i32_18 = arith.constant 16 : i32
    %c0_19 = arith.constant 0 : index
    %c0_20 = arith.constant 0 : index
    %c0_21 = arith.constant 0 : index
    %13 = vector.load %arg13[%c0_19, %c0_20, %c0_21] : memref<16x16x128xf32, #tpu.memory_space<vmem>>, vector<16x16x128xf32>
    %14 = vector.shape_cast %13 : vector<16x16x128xf32> to vector<256x128xf32>
    %c0_22 = arith.constant 0 : index
    %c0_23 = arith.constant 0 : index
    %15 = vector.load %arg9[%c0_22, %c0_23] : memref<4x128xf32, #tpu.memory_space<vmem>>, vector<4x128xf32>
    %cst_24 = arith.constant dense<0.000000e+00> : vector<4x256xf32>
    %16 = tpu.matmul %15, %14, %cst_24 {dimension_numbers = #tpu.dot_dimension_numbers<[1], [1], [0], [0], [0, 0, 1, 0], [], []>} : vector<4x128xf32>, vector<256x128xf32>, vector<4x256xf32> -> vector<4x256xf32>
    %c0_25 = arith.constant 0 : index
    %c0_26 = arith.constant 0 : index
    %17 = vector.load %arg10[%c0_25, %c0_26] : memref<4x1xf32, #tpu.memory_space<vmem>>, vector<4x1xf32>
    %18 = vector.broadcast %17 : vector<4x1xf32> to vector<4x256xf32>
    %19 = arith.addf %16, %18 : vector<4x256xf32>
    %c0_27 = arith.constant 0 : index
    %c0_28 = arith.constant 0 : index
    %c0_29 = arith.constant 0 : index
    %20 = vector.load %arg2[%c0_27, %c0_28, %c0_29] : memref<2x4x256xf32, #tpu.memory_space<vmem>>, vector<1x4x256xf32>
    %21 = vector.shape_cast %20 : vector<1x4x256xf32> to vector<4x256xf32>
    %22 = arith.addf %19, %21 : vector<4x256xf32>
    %c0_30 = arith.constant 0 : index
    %c0_31 = arith.constant 0 : index
    %c0_32 = arith.constant 0 : index
    %23 = vector.load %arg11[%c0_30, %c0_31, %c0_32] : memref<2x4x256xf32, #tpu.memory_space<vmem>>, vector<1x4x256xf32>
    %24 = vector.shape_cast %23 : vector<1x4x256xf32> to vector<4x256xf32>
    %25 = vector.shape_cast %22 : vector<4x256xf32> to vector<1x4x256xf32>
    tpu.vector_store %arg11[%c0_30, %c0_31, %c0_32], %25 {strides = array<i32>} : memref<2x4x256xf32, #tpu.memory_space<vmem>>, vector<1x4x256xf32>,
    %c0_i32_33 = arith.constant 0 : i32
    %c16_i32_34 = arith.constant 16 : i32
    %26 = arith.addi %c0_i32_33, %c16_i32_34 : i32
    %c1_i32_35 = arith.constant 1 : i32
    scf.for %arg14 = %c0_i32_33 to %26 step %c1_i32_35  : i32 {
      %cst_50 = arith.constant 0.000000e+00 : f32
      %40 = vector.broadcast %cst_50 : f32 to vector<16x128xf32>
      %c1_i32_51 = arith.constant 1 : i32
      %41 = arith.muli %arg14, %c1_i32_51 : i32
      %c-1_i32 = arith.constant -1 : i32
      %42 = arith.addi %41, %c-1_i32 : i32
      %c0_i32_52 = arith.constant 0 : i32
      %c15_i32 = arith.constant 15 : i32
      %43 = arith.maxsi %c0_i32_52, %42 : i32
      %44 = arith.minsi %c15_i32, %43 : i32
      %c16_i32_53 = arith.constant 16 : i32
      %45 = arith.addi %c16_i32_53, %44 : i32
      %46 = arith.index_cast %45 : i32 to index
      %c0_54 = arith.constant 0 : index
      %c0_55 = arith.constant 0 : index
      %47 = vector.load %arg12[%46, %c0_54, %c0_55] : memref<32x16x128xf32, #tpu.memory_space<vmem>>, vector<1x16x128xf32>
      %48 = vector.shape_cast %47 : vector<1x16x128xf32> to vector<16x128xf32>
      %49 = vector.broadcast %6 : vector<1x128xf32> to vector<16x128xf32>
      %50 = arith.addf %48, %49 : vector<16x128xf32>
      %cst_56 = arith.constant 0.000000e+00 : f32
      %51 = vector.broadcast %cst_56 : f32 to vector<16x128xf32>
      %52 = arith.cmpf oge, %50, %51 : vector<16x128xf32>
      %53 = vector.broadcast %7 : vector<1x128xf32> to vector<16x128xf32>
      %54 = arith.mulf %50, %53 : vector<16x128xf32>
      %55 = arith.select %52, %50, %54 : vector<16x128xi1>, vector<16x128xf32>
      %c0_i32_57 = arith.constant 0 : i32
      %56 = arith.cmpi sge, %42, %c0_i32_57 : i32
      %c16_i32_58 = arith.constant 16 : i32
      %57 = arith.cmpi slt, %42, %c16_i32_58 : i32
      %58 = arith.andi %56, %57 : i1
      %59 = arith.extui %58 : i1 to i32
      %60 = arith.sitofp %59 : i32 to f32
      %61 = vector.broadcast %60 : f32 to vector<16x128xf32>
      %62 = arith.mulf %55, %61 : vector<16x128xf32>
      %63 = vector.extract_strided_slice %62 {offsets = [0, 0], sizes = [15, 128], strides = [1, 1]} : vector<16x128xf32> to vector<15x128xf32>
      %64 = tpu.concatenate %11, %63 in 0 : vector<1x128xf32>, vector<15x128xf32> -> vector<16x128xf32>
      %65 = vector.extract_strided_slice %62 {offsets = [1, 0], sizes = [15, 128], strides = [1, 1]} : vector<16x128xf32> to vector<15x128xf32>
      %66 = tpu.concatenate %65, %11 in 0 : vector<15x128xf32>, vector<1x128xf32> -> vector<16x128xf32>
      %67 = vector.extract_strided_slice %10 {offsets = [0, 0], sizes = [1, 128], strides = [1, 1]} : vector<9x128xf32> to vector<1x128xf32>
      %68 = vector.shape_cast %67 : vector<1x128xf32> to vector<128xf32>
      %69 = vector.shape_cast %68 : vector<128xf32> to vector<1x128xf32>
      %70 = vector.broadcast %69 : vector<1x128xf32> to vector<16x128xf32>
      %71 = arith.mulf %64, %70 : vector<16x128xf32>
      %72 = arith.addf %40, %71 : vector<16x128xf32>
      %73 = vector.extract_strided_slice %10 {offsets = [1, 0], sizes = [1, 128], strides = [1, 1]} : vector<9x128xf32> to vector<1x128xf32>
      %74 = vector.shape_cast %73 : vector<1x128xf32> to vector<128xf32>
      %75 = vector.shape_cast %74 : vector<128xf32> to vector<1x128xf32>
      %76 = vector.broadcast %75 : vector<1x128xf32> to vector<16x128xf32>
      %77 = arith.mulf %62, %76 : vector<16x128xf32>
      %78 = arith.addf %72, %77 : vector<16x128xf32>
      %79 = vector.extract_strided_slice %10 {offsets = [2, 0], sizes = [1, 128], strides = [1, 1]} : vector<9x128xf32> to vector<1x128xf32>
      %80 = vector.shape_cast %79 : vector<1x128xf32> to vector<128xf32>
      %81 = vector.shape_cast %80 : vector<128xf32> to vector<1x128xf32>
      %82 = vector.broadcast %81 : vector<1x128xf32> to vector<16x128xf32>
      %83 = arith.mulf %66, %82 : vector<16x128xf32>
      %84 = arith.addf %78, %83 : vector<16x128xf32>
      %c1_i32_59 = arith.constant 1 : i32
      %85 = arith.muli %arg14, %c1_i32_59 : i32
      %c0_i32_60 = arith.constant 0 : i32
      %86 = arith.addi %85, %c0_i32_60 : i32
      %c0_i32_61 = arith.constant 0 : i32
      %c15_i32_62 = arith.constant 15 : i32
      %87 = arith.maxsi %c0_i32_61, %86 : i32
      %88 = arith.minsi %c15_i32_62, %87 : i32
      %c16_i32_63 = arith.constant 16 : i32
      %89 = arith.addi %c16_i32_63, %88 : i32
      %90 = arith.index_cast %89 : i32 to index
      %c0_64 = arith.constant 0 : index
      %c0_65 = arith.constant 0 : index
      %91 = vector.load %arg12[%90, %c0_64, %c0_65] : memref<32x16x128xf32, #tpu.memory_space<vmem>>, vector<1x16x128xf32>
      %92 = vector.shape_cast %91 : vector<1x16x128xf32> to vector<16x128xf32>
      %93 = vector.broadcast %6 : vector<1x128xf32> to vector<16x128xf32>
      %94 = arith.addf %92, %93 : vector<16x128xf32>
      %cst_66 = arith.constant 0.000000e+00 : f32
      %95 = vector.broadcast %cst_66 : f32 to vector<16x128xf32>
      %96 = arith.cmpf oge, %94, %95 : vector<16x128xf32>
      %97 = vector.broadcast %7 : vector<1x128xf32> to vector<16x128xf32>
      %98 = arith.mulf %94, %97 : vector<16x128xf32>
      %99 = arith.select %96, %94, %98 : vector<16x128xi1>, vector<16x128xf32>
      %100 = vector.extract_strided_slice %99 {offsets = [0, 0], sizes = [15, 128], strides = [1, 1]} : vector<16x128xf32> to vector<15x128xf32>
      %101 = tpu.concatenate %11, %100 in 0 : vector<1x128xf32>, vector<15x128xf32> -> vector<16x128xf32>
      %102 = vector.extract_strided_slice %99 {offsets = [1, 0], sizes = [15, 128], strides = [1, 1]} : vector<16x128xf32> to vector<15x128xf32>
      %103 = tpu.concatenate %102, %11 in 0 : vector<15x128xf32>, vector<1x128xf32> -> vector<16x128xf32>
      %104 = vector.extract_strided_slice %10 {offsets = [3, 0], sizes = [1, 128], strides = [1, 1]} : vector<9x128xf32> to vector<1x128xf32>
      %105 = vector.shape_cast %104 : vector<1x128xf32> to vector<128xf32>
      %106 = vector.shape_cast %105 : vector<128xf32> to vector<1x128xf32>
      %107 = vector.broadcast %106 : vector<1x128xf32> to vector<16x128xf32>
      %108 = arith.mulf %101, %107 : vector<16x128xf32>
      %109 = arith.addf %84, %108 : vector<16x128xf32>
      %110 = vector.extract_strided_slice %10 {offsets = [4, 0], sizes = [1, 128], strides = [1, 1]} : vector<9x128xf32> to vector<1x128xf32>
      %111 = vector.shape_cast %110 : vector<1x128xf32> to vector<128xf32>
      %112 = vector.shape_cast %111 : vector<128xf32> to vector<1x128xf32>
      %113 = vector.broadcast %112 : vector<1x128xf32> to vector<16x128xf32>
      %114 = arith.mulf %99, %113 : vector<16x128xf32>
      %115 = arith.addf %109, %114 : vector<16x128xf32>
      %116 = vector.extract_strided_slice %10 {offsets = [5, 0], sizes = [1, 128], strides = [1, 1]} : vector<9x128xf32> to vector<1x128xf32>
      %117 = vector.shape_cast %116 : vector<1x128xf32> to vector<128xf32>
      %118 = vector.shape_cast %117 : vector<128xf32> to vector<1x128xf32>
      %119 = vector.broadcast %118 : vector<1x128xf32> to vector<16x128xf32>
      %120 = arith.mulf %103, %119 : vector<16x128xf32>
      %121 = arith.addf %115, %120 : vector<16x128xf32>
      %c1_i32_67 = arith.constant 1 : i32
      %122 = arith.muli %arg14, %c1_i32_67 : i32
      %c1_i32_68 = arith.constant 1 : i32
      %123 = arith.addi %122, %c1_i32_68 : i32
      %c0_i32_69 = arith.constant 0 : i32
      %c15_i32_70 = arith.constant 15 : i32
      %124 = arith.maxsi %c0_i32_69, %123 : i32
      %125 = arith.minsi %c15_i32_70, %124 : i32
      %c16_i32_71 = arith.constant 16 : i32
      %126 = arith.addi %c16_i32_71, %125 : i32
      %127 = arith.index_cast %126 : i32 to index
      %c0_72 = arith.constant 0 : index
      %c0_73 = arith.constant 0 : index
      %128 = vector.load %arg12[%127, %c0_72, %c0_73] : memref<32x16x128xf32, #tpu.memory_space<vmem>>, vector<1x16x128xf32>
      %129 = vector.shape_cast %128 : vector<1x16x128xf32> to vector<16x128xf32>
      %130 = vector.broadcast %6 : vector<1x128xf32> to vector<16x128xf32>
      %131 = arith.addf %129, %130 : vector<16x128xf32>
      %cst_74 = arith.constant 0.000000e+00 : f32
      %132 = vector.broadcast %cst_74 : f32 to vector<16x128xf32>
      %133 = arith.cmpf oge, %131, %132 : vector<16x128xf32>
      %134 = vector.broadcast %7 : vector<1x128xf32> to vector<16x128xf32>
      %135 = arith.mulf %131, %134 : vector<16x128xf32>
      %136 = arith.select %133, %131, %135 : vector<16x128xi1>, vector<16x128xf32>
      %c0_i32_75 = arith.constant 0 : i32
      %137 = arith.cmpi sge, %123, %c0_i32_75 : i32
      %c16_i32_76 = arith.constant 16 : i32
      %138 = arith.cmpi slt, %123, %c16_i32_76 : i32
      %139 = arith.andi %137, %138 : i1
      %140 = arith.extui %139 : i1 to i32
      %141 = arith.sitofp %140 : i32 to f32
      %142 = vector.broadcast %141 : f32 to vector<16x128xf32>
      %143 = arith.mulf %136, %142 : vector<16x128xf32>
      %144 = vector.extract_strided_slice %143 {offsets = [0, 0], sizes = [15, 128], strides = [1, 1]} : vector<16x128xf32> to vector<15x128xf32>
      %145 = tpu.concatenate %11, %144 in 0 : vector<1x128xf32>, vector<15x128xf32> -> vector<16x128xf32>
      %146 = vector.extract_strided_slice %143 {offsets = [1, 0], sizes = [15, 128], strides = [1, 1]} : vector<16x128xf32> to vector<15x128xf32>
      %147 = tpu.concatenate %146, %11 in 0 : vector<15x128xf32>, vector<1x128xf32> -> vector<16x128xf32>
      %148 = vector.extract_strided_slice %10 {offsets = [6, 0], sizes = [1, 128], strides = [1, 1]} : vector<9x128xf32> to vector<1x128xf32>
      %149 = vector.shape_cast %148 : vector<1x128xf32> to vector<128xf32>
      %150 = vector.shape_cast %149 : vector<128xf32> to vector<1x128xf32>
      %151 = vector.broadcast %150 : vector<1x128xf32> to vector<16x128xf32>
      %152 = arith.mulf %145, %151 : vector<16x128xf32>
      %153 = arith.addf %121, %152 : vector<16x128xf32>
      %154 = vector.extract_strided_slice %10 {offsets = [7, 0], sizes = [1, 128], strides = [1, 1]} : vector<9x128xf32> to vector<1x128xf32>
      %155 = vector.shape_cast %154 : vector<1x128xf32> to vector<128xf32>
      %156 = vector.shape_cast %155 : vector<128xf32> to vector<1x128xf32>
      %157 = vector.broadcast %156 : vector<1x128xf32> to vector<16x128xf32>
      %158 = arith.mulf %143, %157 : vector<16x128xf32>
      %159 = arith.addf %153, %158 : vector<16x128xf32>
      %160 = vector.extract_strided_slice %10 {offsets = [8, 0], sizes = [1, 128], strides = [1, 1]} : vector<9x128xf32> to vector<1x128xf32>
      %161 = vector.shape_cast %160 : vector<1x128xf32> to vector<128xf32>
      %162 = vector.shape_cast %161 : vector<128xf32> to vector<1x128xf32>
      %163 = vector.broadcast %162 : vector<1x128xf32> to vector<16x128xf32>
      %164 = arith.mulf %147, %163 : vector<16x128xf32>
      %165 = arith.addf %159, %164 : vector<16x128xf32>
      %166 = vector.broadcast %8 : vector<1x128xf32> to vector<16x128xf32>
      %167 = arith.addf %165, %166 : vector<16x128xf32>
      %cst_77 = arith.constant 0.000000e+00 : f32
      %168 = vector.broadcast %cst_77 : f32 to vector<16x128xf32>
      %169 = arith.cmpf oge, %167, %168 : vector<16x128xf32>
      %170 = vector.broadcast %9 : vector<1x128xf32> to vector<16x128xf32>
      %171 = arith.mulf %167, %170 : vector<16x128xf32>
      %172 = arith.select %169, %167, %171 : vector<16x128xi1>, vector<16x128xf32>
      %173 = arith.index_cast %arg14 : i32 to index
      %c0_78 = arith.constant 0 : index
      %c0_79 = arith.constant 0 : index
      %174 = vector.load %arg13[%173, %c0_78, %c0_79] : memref<16x16x128xf32, #tpu.memory_space<vmem>>, vector<1x16x128xf32>
      %175 = vector.shape_cast %174 : vector<1x16x128xf32> to vector<16x128xf32>
      %176 = vector.shape_cast %172 : vector<16x128xf32> to vector<1x16x128xf32>
      tpu.vector_store %arg13[%173, %c0_78, %c0_79], %176 {strides = array<i32>} : memref<16x16x128xf32, #tpu.memory_space<vmem>>, vector<1x16x128xf32>,
    }
    %c16_i32_36 = arith.constant 16 : i32
    %c0_37 = arith.constant 0 : index
    %c0_38 = arith.constant 0 : index
    %c0_39 = arith.constant 0 : index
    %27 = vector.load %arg13[%c0_37, %c0_38, %c0_39] : memref<16x16x128xf32, #tpu.memory_space<vmem>>, vector<16x16x128xf32>
    %28 = vector.shape_cast %27 : vector<16x16x128xf32> to vector<256x128xf32>
    %c0_40 = arith.constant 0 : index
    %c0_41 = arith.constant 0 : index
    %29 = vector.load %arg9[%c0_40, %c0_41] : memref<4x128xf32, #tpu.memory_space<vmem>>, vector<4x128xf32>
    %cst_42 = arith.constant dense<0.000000e+00> : vector<4x256xf32>
    %30 = tpu.matmul %29, %28, %cst_42 {dimension_numbers = #tpu.dot_dimension_numbers<[1], [1], [0], [0], [0, 0, 1, 0], [], []>} : vector<4x128xf32>, vector<256x128xf32>, vector<4x256xf32> -> vector<4x256xf32>
    %c0_43 = arith.constant 0 : index
    %c0_44 = arith.constant 0 : index
    %31 = vector.load %arg10[%c0_43, %c0_44] : memref<4x1xf32, #tpu.memory_space<vmem>>, vector<4x1xf32>
    %32 = vector.broadcast %31 : vector<4x1xf32> to vector<4x256xf32>
    %33 = arith.addf %30, %32 : vector<4x256xf32>
    %c1 = arith.constant 1 : index
    %c0_45 = arith.constant 0 : index
    %c0_46 = arith.constant 0 : index
    %34 = vector.load %arg2[%c1, %c0_45, %c0_46] : memref<2x4x256xf32, #tpu.memory_space<vmem>>, vector<1x4x256xf32>
    %35 = vector.shape_cast %34 : vector<1x4x256xf32> to vector<4x256xf32>
    %36 = arith.addf %33, %35 : vector<4x256xf32>
    %c1_47 = arith.constant 1 : index
    %c0_48 = arith.constant 0 : index
    %c0_49 = arith.constant 0 : index
    %37 = vector.load %arg11[%c1_47, %c0_48, %c0_49] : memref<2x4x256xf32, #tpu.memory_space<vmem>>, vector<1x4x256xf32>
    %38 = vector.shape_cast %37 : vector<1x4x256xf32> to vector<4x256xf32>
    %39 = vector.shape_cast %36 : vector<4x256xf32> to vector<1x4x256xf32>
    tpu.vector_store %arg11[%c1_47, %c0_48, %c0_49], %39 {strides = array<i32>} : memref<2x4x256xf32, #tpu.memory_space<vmem>>, vector<1x4x256xf32>,
    return
  }
  func.func @transform_0(%arg0: i32) -> (i32, i32, i32) {
    %c0_i32 = arith.constant 0 : i32
    %c0_i32_0 = arith.constant 0 : i32
    %c0_i32_1 = arith.constant 0 : i32
    return %arg0, %c0_i32, %c0_i32_0 : i32, i32, i32
  }
  func.func @transform_1(%arg0: i32) -> (i32, i32, i32) {
    %c0_i32 = arith.constant 0 : i32
    %c0_i32_0 = arith.constant 0 : i32
    %c0_i32_1 = arith.constant 0 : i32
    return %arg0, %c0_i32, %c0_i32_0 : i32, i32, i32
  }
  func.func @transform_2(%arg0: i32) -> (i32, i32) {
    %c0_i32 = arith.constant 0 : i32
    %c0_i32_0 = arith.constant 0 : i32
    %c0_i32_1 = arith.constant 0 : i32
    return %c0_i32, %c0_i32_0 : i32, i32
  }
  func.func @transform_3(%arg0: i32) -> (i32, i32) {
    %c0_i32 = arith.constant 0 : i32
    %c0_i32_0 = arith.constant 0 : i32
    %c0_i32_1 = arith.constant 0 : i32
    return %c0_i32, %c0_i32_0 : i32, i32
  }
  func.func @transform_4(%arg0: i32) -> (i32, i32) {
    %c0_i32 = arith.constant 0 : i32
    %c0_i32_0 = arith.constant 0 : i32
    %c0_i32_1 = arith.constant 0 : i32
    return %c0_i32, %c0_i32_0 : i32, i32
  }
  func.func @transform_5(%arg0: i32) -> (i32, i32) {
    %c0_i32 = arith.constant 0 : i32
    %c0_i32_0 = arith.constant 0 : i32
    %c0_i32_1 = arith.constant 0 : i32
    return %c0_i32, %c0_i32_0 : i32, i32
  }
  func.func @transform_6(%arg0: i32) -> (i32, i32) {
    %c0_i32 = arith.constant 0 : i32
    %c0_i32_0 = arith.constant 0 : i32
    %c0_i32_1 = arith.constant 0 : i32
    return %c0_i32, %c0_i32_0 : i32, i32
  }
  func.func @transform_7(%arg0: i32) -> (i32, i32) {
    %c0_i32 = arith.constant 0 : i32
    %c0_i32_0 = arith.constant 0 : i32
    %c0_i32_1 = arith.constant 0 : i32
    return %c0_i32, %c0_i32_0 : i32, i32
  }
  func.func @transform_8(%arg0: i32) -> (i32, i32) {
    %c0_i32 = arith.constant 0 : i32
    %c0_i32_0 = arith.constant 0 : i32
    %c0_i32_1 = arith.constant 0 : i32
    return %c0_i32, %c0_i32_0 : i32, i32
  }
  func.func @transform_9(%arg0: i32) -> (i32, i32) {
    %c0_i32 = arith.constant 0 : i32
    %c0_i32_0 = arith.constant 0 : i32
    %c0_i32_1 = arith.constant 0 : i32
    return %c0_i32, %c0_i32_0 : i32, i32
  }
  func.func @transform_10(%arg0: i32) -> (i32, i32, i32) {
    %c0_i32 = arith.constant 0 : i32
    %c0_i32_0 = arith.constant 0 : i32
    %c0_i32_1 = arith.constant 0 : i32
    return %arg0, %c0_i32, %c0_i32_0 : i32, i32, i32
  }
}

</mosaic_0001>

<bundles_post_ra>
// kernel: bottleneck_forward_pallas.1
= control target key start
LH: loop header
LB: loop body
LE: loop exit
PB: predicated region body
PF: predicated region fallthrough
CT: control target
= control target key end

     0   :  { %s1855_s13 = smov 0   ;;  %s2280_s0 = inlined_call_operand.vmem [shape: f32[4,256,4], index: 0, kind: input, shape index: {}]   ;;  %s2281_s1 = inlined_call_operand.vmem [shape: f32[4,4,256], index: 1, kind: input, shape index: {}]   ;;  %s2282_s2 = inlined_call_operand.vmem [shape: f32[4,128], index: 2, kind: input, shape index: {}]   ;;  %s2283_s3 = inlined_call_operand.vmem [shape: f32[1,128], index: 3, kind: input, shape index: {}]   ;;  %s2284_s4 = inlined_call_operand.vmem [shape: f32[1,128], index: 4, kind: input, shape index: {}]   ;;  %s2285_s5 = inlined_call_operand.vmem [shape: f32[9,128], index: 5, kind: input, shape index: {}]   ;;  %s2286_s6 = inlined_call_operand.vmem [shape: f32[1,128], index: 6, kind: input, shape index: {}]   ;;  %s2287_s7 = inlined_call_operand.vmem [shape: f32[1,128], index: 7, kind: input, shape index: {}]   ;;  %s2288_s8 = inlined_call_operand.vmem [shape: f32[4,128], index: 8, kind: input, shape index: {}]   ;;  %s2289_s9 = inlined_call_operand.vmem [shape: f32[4,1], index: 9, kind: input, shape index: {}]   ;;  %s2290_s10 = inlined_call_operand.vmem [shape: f32[4,4,256], index: 10, kind: output, shape index: {}]  }
   0x1 LB: > { %s1600_s14 = sadd.s32 4294967295, %s1789_s13   ;;  %p1604_p0 = scmp.ge.s32.totalorder %s1789_s13, 1  ;;  %s1789_s13 = sphi %s1855_s13, %s20_s13  }
   0x2   : > { %p326_p1 = scmp.lt.s32.totalorder %s1789_s13, 3 }
   0x4   : > { %p327_p2 = pnand %p1604_p0, %p326_p1 }
   0x5   : > { %s1605_s17 = sshll.u32 (!%p327_p2), %s1600_s14, 1 }
   0x6   : > { %330 = sbr.rel (%p327_p2) target bundleno = 832 (0x340), region = 60  ;;  %p373_p3 = scmp.lt.s32.totalorder (!%p327_p2), %s1605_s17, 3 }
   0xb   : > { %v457_v0 = vld [vmem:[%s2282_s2] sm:$0xf]  ;;  %vm651_vm0 = vcmask 1043456   ;;  %s2296_s17 = smov (!%p373_p3, %s1605_s17), 3  ;;  %vm458_vm1 = vcmask 31744  }
   0xc   : > { %1614 = vmatpush.msk.msra.mxu0 %vm651_vm0, %v457_v0  ;;  %1747 = vmatpush.msk.msra.mxu3 %vm651_vm0, %v457_v0  ;;  %s1731_s18 = sshll.u32 %s2296_s17, 8  ;;  %s1732_s19 = sshll.u32 %s2296_s17, 3 }
   0xd   : > { %1746 = vmatpush.msk.msra.mxu2 %vm651_vm0, %v457_v0  ;;  %s1872_s22 = scalar_lea.vmem %s2280_s0, %s1731_s18  ;;  %s1877_s25 = scalar_lea.vmem %s2281_s1, %s1732_s19 }
   0xe   : > { %s1882_s28 = scalar_lea.vmem %s2290_s10, %s1732_s19  ;;  %v393_v1 = vld [vmem:[%s1872_s22] sm:$0xff]  ;;  %v436_v2 = vld [vmem:[%s1872_s22 + $0x158] sm:$0xff]  ;;  %v394_v4 = vld [vmem:[%s1872_s22 + $0x8] sm:$0xff] }
   0xf   : > { %1615 = vmatmul.msk.f32.vlgmr.msra.gmra.mxu0 %vm458_vm1, %v393_v1  ;;  %1658 = vmatmul.msk.f32.vlgmr.msra.gmra.mxu3 %vm458_vm1, %v436_v2  ;;  %v416_v3 = vld [vmem:[%s1872_s22 + $0xb8] sm:$0xff]  ;;  %v437_v5 = vld [vmem:[%s1872_s22 + $0x160] sm:$0xff]  ;;  %v395_v7 = vld [vmem:[%s1872_s22 + $0x10] sm:$0xff] }
  0x10   : > { %1638 = vmatmul.msk.f32.vlgmr.msra.gmra.mxu2 %vm458_vm1, %v416_v3  ;;  %v417_v6 = vld [vmem:[%s1872_s22 + $0xc0] sm:$0xff]  ;;  %v438_v8 = vld [vmem:[%s1872_s22 + $0x168] sm:$0xff]  ;;  %v396_v10 = vld [vmem:[%s1872_s22 + $0x18] sm:$0xff] }
  0x11   : > { %v418_v9 = vld [vmem:[%s1872_s22 + $0xc8] sm:$0xff]  ;;  %v439_v11 = vld [vmem:[%s1872_s22 + $0x170] sm:$0xff]  ;;  %v397_v13 = vld [vmem:[%s1872_s22 + $0x20] sm:$0xff] }
  0x12   : > { %v419_v12 = vld [vmem:[%s1872_s22 + $0xd0] sm:$0xff]  ;;  %v440_v14 = vld [vmem:[%s1872_s22 + $0x178] sm:$0xff]  ;;  %v398_v16 = vld [vmem:[%s1872_s22 + $0x28] sm:$0xff] }
  0x13   : > { %v420_v15 = vld [vmem:[%s1872_s22 + $0xd8] sm:$0xff]  ;;  %v441_v17 = vld [vmem:[%s1872_s22 + $0x180] sm:$0xff]  ;;  %v399_v19 = vld [vmem:[%s1872_s22 + $0x30] sm:$0xff] }
  0x14   : > { %v421_v18 = vld [vmem:[%s1872_s22 + $0xe0] sm:$0xff]  ;;  %v442_v20 = vld [vmem:[%s1872_s22 + $0x188] sm:$0xff]  ;;  %v400_v22 = vld [vmem:[%s1872_s22 + $0x38] sm:$0xff] }
  0x15   : > { %v422_v21 = vld [vmem:[%s1872_s22 + $0xe8] sm:$0xff]  ;;  %v443_v23 = vld [vmem:[%s1872_s22 + $0x190] sm:$0xff]  ;;  %v401_v25 = vld [vmem:[%s1872_s22 + $0x40] sm:$0xff] }
  0x16   : > { %v423_v24 = vld [vmem:[%s1872_s22 + $0xf0] sm:$0xff]  ;;  %v444_v26 = vld [vmem:[%s1872_s22 + $0x198] sm:$0xff]  ;;  %v402_v28 = vld [vmem:[%s1872_s22 + $0x48] sm:$0xff] }
  0x17   : > { %1616 = vmatmul.msk.f32.gmra.mxu0 %vm458_vm1, %v394_v4  ;;  %1659 = vmatmul.msk.f32.gmra.mxu3 %vm458_vm1, %v437_v5  ;;  %v424_v27 = vld [vmem:[%s1872_s22 + $0xf8] sm:$0xff]  ;;  %v445_v29 = vld [vmem:[%s1872_s22 + $0x1a0] sm:$0xff]  ;;  %v403_v31 = vld [vmem:[%s1872_s22 + $0x50] sm:$0xff] }
  0x18   : > { %1639 = vmatmul.msk.f32.gmra.mxu2 %vm458_vm1, %v417_v6  ;;  %v425_v30 = vld [vmem:[%s1872_s22 + $0x100] sm:$0xff]  ;;  %v446_v32 = vld [vmem:[%s1872_s22 + $0x1a8] sm:$0xff]  ;;  %v404_v34 = vld [vmem:[%s1872_s22 + $0x58] sm:$0xff] }
  0x19   : > { %v426_v33 = vld [vmem:[%s1872_s22 + $0x108] sm:$0xff]  ;;  %v447_v35 = vld [vmem:[%s1872_s22 + $0x1b0] sm:$0xff]  ;;  %v405_v37 = vld [vmem:[%s1872_s22 + $0x60] sm:$0xff] }
  0x1a   : > { %v427_v36 = vld [vmem:[%s1872_s22 + $0x110] sm:$0xff]  ;;  %v448_v38 = vld [vmem:[%s1872_s22 + $0x1b8] sm:$0xff]  ;;  %v406_v40 = vld [vmem:[%s1872_s22 + $0x68] sm:$0xff] }
  0x1b   : > { %v428_v39 = vld [vmem:[%s1872_s22 + $0x118] sm:$0xff]  ;;  %v449_v41 = vld [vmem:[%s1872_s22 + $0x1c0] sm:$0xff]  ;;  %v407_v43 = vld [vmem:[%s1872_s22 + $0x70] sm:$0xff] }
  0x1c   : > { %v429_v42 = vld [vmem:[%s1872_s22 + $0x120] sm:$0xff]  ;;  %v450_v44 = vld [vmem:[%s1872_s22 + $0x1c8] sm:$0xff]  ;;  %v408_v46 = vld [vmem:[%s1872_s22 + $0x78] sm:$0xff] }
  0x1d   : > { %v430_v45 = vld [vmem:[%s1872_s22 + $0x128] sm:$0xff]  ;;  %v451_v47 = vld [vmem:[%s1872_s22 + $0x1d0] sm:$0xff]  ;;  %v409_v50 = vld [vmem:[%s1872_s22 + $0x80] sm:$0xff] }
  0x1e   : > { %v431_v48 = vld [vmem:[%s1872_s22 + $0x130] sm:$0xff]  ;;  %v452_v51 = vld [vmem:[%s1872_s22 + $0x1d8] sm:$0xff]  ;;  %v410_v56 = vld [vmem:[%s1872_s22 + $0x88] sm:$0xff] }
  0x1f   : > { %1617 = vmatmul.msk.f32.gmra.mxu0 %vm458_vm1, %v395_v7  ;;  %1660 = vmatmul.msk.f32.gmra.mxu3 %vm458_vm1, %v438_v8  ;;  %v432_v52 = vld [vmem:[%s1872_s22 + $0x138] sm:$0xff]  ;;  %v453_v57 = vld [vmem:[%s1872_s22 + $0x1e0] sm:$0xff]  ;;  %v411_v62 = vld [vmem:[%s1872_s22 + $0x90] sm:$0xff] }
  0x20   : > { %1640 = vmatmul.msk.f32.gmra.mxu2 %vm458_vm1, %v418_v9  ;;  %v433_v58 = vld [vmem:[%s1872_s22 + $0x140] sm:$0xff]  ;;  %v454_v63 = vld [vmem:[%s1872_s22 + $0x1e8] sm:$0xff]  ;;  %v412_v4 = vld [vmem:[%s1872_s22 + $0x98] sm:$0xff] }
  0x21   : > { %v434_v0 = vld [vmem:[%s1872_s22 + $0x148] sm:$0xff]  ;;  %v455_v5 = vld [vmem:[%s1872_s22 + $0x1f0] sm:$0xff] }
  0x22   : > { %v435_v6 = vld [vmem:[%s1872_s22 + $0x150] sm:$0xff] }
  0x27   : > { %1618 = vmatmul.msk.f32.gmra.mxu0 %vm458_vm1, %v396_v10  ;;  %1661 = vmatmul.msk.f32.gmra.mxu3 %vm458_vm1, %v439_v11  ;;  %v413_v10 = vld [vmem:[%s1872_s22 + $0xa0] sm:$0xff]  ;;  %v456_v11 = vld [vmem:[%s1872_s22 + $0x1f8] sm:$0xff] }
  0x28   : > { %1641 = vmatmul.msk.f32.gmra.mxu2 %vm458_vm1, %v419_v12 }
  0x2f   : > { %1619 = vmatmul.msk.f32.gmra.mxu0 %vm458_vm1, %v397_v13  ;;  %1662 = vmatmul.msk.f32.gmra.mxu3 %vm458_vm1, %v440_v14 }
  0x30   : > { %1642 = vmatmul.msk.f32.gmra.mxu2 %vm458_vm1, %v420_v15  ;;  %v414_v15 = vld [vmem:[%s1872_s22 + $0xa8] sm:$0xff] }
  0x37   : > { %1620 = vmatmul.msk.f32.gmra.mxu0 %vm458_vm1, %v398_v16  ;;  %1663 = vmatmul.msk.f32.gmra.mxu3 %vm458_vm1, %v441_v17 }
  0x38   : > { %1643 = vmatmul.msk.f32.gmra.mxu2 %vm458_vm1, %v421_v18 }
  0x3f   : > { %1621 = vmatmul.msk.f32.gmra.mxu0 %vm458_vm1, %v399_v19  ;;  %1664 = vmatmul.msk.f32.gmra.mxu3 %vm458_vm1, %v442_v20  ;;  %v415_v19 = vld [vmem:[%s1872_s22 + $0xb0] sm:$0xff]  ;;  %s2042_s22 = smov 0  }
  0x40   : > { %1644 = vmatmul.msk.f32.gmra.mxu2 %vm458_vm1, %v422_v21 }
  0x47   : > { %1622 = vmatmul.msk.f32.gmra.mxu0 %vm458_vm1, %v400_v22  ;;  %1665 = vmatmul.msk.f32.gmra.mxu3 %vm458_vm1, %v443_v23 }
  0x48   : > { %1645 = vmatmul.msk.f32.gmra.mxu2 %vm458_vm1, %v423_v24 }
  0x4f   : > { %1623 = vmatmul.msk.f32.gmra.mxu0 %vm458_vm1, %v401_v25  ;;  %1666 = vmatmul.msk.f32.gmra.mxu3 %vm458_vm1, %v444_v26 }
  0x50   : > { %1646 = vmatmul.msk.f32.gmra.mxu2 %vm458_vm1, %v424_v27 }
  0x57   : > { %1624 = vmatmul.msk.f32.gmra.mxu0 %vm458_vm1, %v402_v28  ;;  %1667 = vmatmul.msk.f32.gmra.mxu3 %vm458_vm1, %v445_v29 }
  0x58   : > { %1647 = vmatmul.msk.f32.gmra.mxu2 %vm458_vm1, %v425_v30 }
  0x5f   : > { %1625 = vmatmul.msk.f32.gmra.mxu0 %vm458_vm1, %v403_v31  ;;  %1668 = vmatmul.msk.f32.gmra.mxu3 %vm458_vm1, %v446_v32 }
  0x60   : > { %1648 = vmatmul.msk.f32.gmra.mxu2 %vm458_vm1, %v426_v33 }
  0x67   : > { %1626 = vmatmul.msk.f32.gmra.mxu0 %vm458_vm1, %v404_v34  ;;  %1669 = vmatmul.msk.f32.gmra.mxu3 %vm458_vm1, %v447_v35 }
  0x68   : > { %1649 = vmatmul.msk.f32.gmra.mxu2 %vm458_vm1, %v427_v36 }
  0x6f   : > { %1627 = vmatmul.msk.f32.gmra.mxu0 %vm458_vm1, %v405_v37  ;;  %1670 = vmatmul.msk.f32.gmra.mxu3 %vm458_vm1, %v448_v38 }
  0x70   : > { %1650 = vmatmul.msk.f32.gmra.mxu2 %vm458_vm1, %v428_v39 }
  0x77   : > { %1628 = vmatmul.msk.f32.gmra.mxu0 %vm458_vm1, %v406_v40  ;;  %1671 = vmatmul.msk.f32.gmra.mxu3 %vm458_vm1, %v449_v41 }
  0x78   : > { %1651 = vmatmul.msk.f32.gmra.mxu2 %vm458_vm1, %v429_v42 }
  0x7f   : > { %1629 = vmatmul.msk.f32.gmra.mxu0 %vm458_vm1, %v407_v43  ;;  %1672 = vmatmul.msk.f32.gmra.mxu3 %vm458_vm1, %v450_v44 }
  0x80   : > { %1652 = vmatmul.msk.f32.gmra.mxu2 %vm458_vm1, %v430_v45 }
  0x87   : > { %1630 = vmatmul.msk.f32.gmra.mxu0 %vm458_vm1, %v408_v46  ;;  %1673 = vmatmul.msk.f32.gmra.mxu3 %vm458_vm1, %v451_v47 }
  0x88   : > { %1653 = vmatmul.msk.f32.gmra.mxu2 %vm458_vm1, %v431_v48 }
  0x8c   : > { %v672_v49 = vpop.f32.mrf.mxu0 }
  0x8d   : > { %864 = vst [vmem:[#allocation2] sm:$0xff] %v672_v49 }
  0x8f   : > { %1631 = vmatmul.msk.f32.gmra.mxu0 %vm458_vm1, %v409_v50  ;;  %1674 = vmatmul.msk.f32.gmra.mxu3 %vm458_vm1, %v452_v51 }
  0x90   : > { %1654 = vmatmul.msk.f32.gmra.mxu2 %vm458_vm1, %v432_v52 }
  0x92   : > { %v801_v53 = vpop.f32.mrf.mxu3 }
  0x93   : > { %907 = vst [vmem:[#allocation2 + $0x158] sm:$0xff] %v801_v53  ;;  %v741_v54 = vpop.f32.mrf.mxu2 }
  0x94   : > { %v675_v55 = vpop.f32.mrf.mxu0  ;;  %887 = vst [vmem:[#allocation2 + $0xb8] sm:$0xff] %v741_v54 }
  0x95   : > { %865 = vst [vmem:[#allocation2 + $0x8] sm:$0xff] %v675_v55 }
  0x97   : > { %1632 = vmatmul.msk.f32.gmra.mxu0 %vm458_vm1, %v410_v56  ;;  %1675 = vmatmul.msk.f32.gmra.mxu3 %vm458_vm1, %v453_v57  ;;  %v2015_v56 = vld [vmem:[%s2283_s3] sm:$0x1] }
  0x98   : > { %1655 = vmatmul.msk.f32.gmra.mxu2 %vm458_vm1, %v433_v58  ;;  %v2020_v57 = vld [vmem:[%s2284_s4] sm:$0x1] }
  0x99   : > { %v2025_v58 = vld [vmem:[%s2285_s5] sm:$0xff] }
  0x9a   : > { %v804_v59 = vpop.f32.mrf.mxu3 }
  0x9b   : > { %908 = vst [vmem:[#allocation2 + $0x160] sm:$0xff] %v804_v59  ;;  %v744_v60 = vpop.f32.mrf.mxu2  ;;  %v2030_v59 = vld [vmem:[%s2286_s6] sm:$0x1] }
  0x9c   : > { %v678_v61 = vpop.f32.mrf.mxu0  ;;  %888 = vst [vmem:[#allocation2 + $0xc0] sm:$0xff] %v744_v60  ;;  %v2035_v60 = vld [vmem:[%s2287_s7] sm:$0x1] }
  0x9d   : > { %866 = vst [vmem:[#allocation2 + $0x10] sm:$0xff] %v678_v61  ;;  %v2040_v61 = vld [vmem:[%s2285_s5 + $0x8] sm:$0x1] }
  0x9f   : > { %1633 = vmatmul.msk.f32.gmra.mxu0 %vm458_vm1, %v411_v62  ;;  %1676 = vmatmul.msk.f32.gmra.mxu3 %vm458_vm1, %v454_v63 }
  0xa0   : > { %1656 = vmatmul.msk.f32.gmra.mxu2 %vm458_vm1, %v434_v0 }
  0xa2   : > { %v807_v1 = vpop.f32.mrf.mxu3 }
  0xa3   : > { %909 = vst [vmem:[#allocation2 + $0x168] sm:$0xff] %v807_v1  ;;  %v747_v2 = vpop.f32.mrf.mxu2 }
  0xa4   : > { %v681_v3 = vpop.f32.mrf.mxu0  ;;  %889 = vst [vmem:[#allocation2 + $0xc8] sm:$0xff] %v747_v2 }
  0xa5   : > { %867 = vst [vmem:[#allocation2 + $0x18] sm:$0xff] %v681_v3 }
  0xa7   : > { %1634 = vmatmul.msk.f32.gmra.mxu0 %vm458_vm1, %v412_v4  ;;  %1677 = vmatmul.msk.f32.gmra.mxu3 %vm458_vm1, %v455_v5 }
  0xa8   : > { %1657 = vmatmul.msk.f32.gmra.mxu2 %vm458_vm1, %v435_v6 }
  0xaa   : > { %v810_v7 = vpop.f32.mrf.mxu3 }
  0xab   : > { %910 = vst [vmem:[#allocation2 + $0x170] sm:$0xff] %v810_v7  ;;  %v750_v8 = vpop.f32.mrf.mxu2 }
  0xac   : > { %v684_v9 = vpop.f32.mrf.mxu0  ;;  %890 = vst [vmem:[#allocation2 + $0xd0] sm:$0xff] %v750_v8 }
  0xad   : > { %868 = vst [vmem:[#allocation2 + $0x20] sm:$0xff] %v684_v9 }
  0xaf   : > { %1635 = vmatmul.msk.f32.gmra.mxu0 %vm458_vm1, %v413_v10  ;;  %1678 = vmatmul.msk.f32.gmra.mxu3 %vm458_vm1, %v456_v11 }
  0xb2   : > { %v813_v12 = vpop.f32.mrf.mxu3 }
  0xb3   : > { %911 = vst [vmem:[#allocation2 + $0x178] sm:$0xff] %v813_v12  ;;  %v753_v13 = vpop.f32.mrf.mxu2 }
  0xb4   : > { %v687_v14 = vpop.f32.mrf.mxu0  ;;  %891 = vst [vmem:[#allocation2 + $0xd8] sm:$0xff] %v753_v13 }
  0xb5   : > { %869 = vst [vmem:[#allocation2 + $0x28] sm:$0xff] %v687_v14 }
  0xb7   : > { %1636 = vmatmul.msk.f32.gmra.mxu0 %vm458_vm1, %v414_v15 }
  0xba   : > { %v816_v16 = vpop.f32.mrf.mxu3 }
  0xbb   : > { %912 = vst [vmem:[#allocation2 + $0x180] sm:$0xff] %v816_v16  ;;  %v756_v17 = vpop.f32.mrf.mxu2 }
  0xbc   : > { %v690_v18 = vpop.f32.mrf.mxu0  ;;  %892 = vst [vmem:[#allocation2 + $0xe0] sm:$0xff] %v756_v17 }
  0xbd   : > { %870 = vst [vmem:[#allocation2 + $0x30] sm:$0xff] %v690_v18 }
  0xbf   : > { %1637 = vmatmul.msk.f32.gmra.mxu0 %vm458_vm1, %v415_v19 }
  0xc2   : > { %v819_v20 = vpop.f32.mrf.mxu3 }
  0xc3   : > { %913 = vst [vmem:[#allocation2 + $0x188] sm:$0xff] %v819_v20  ;;  %v759_v21 = vpop.f32.mrf.mxu2 }
  0xc4   : > { %v693_v22 = vpop.f32.mrf.mxu0  ;;  %893 = vst [vmem:[#allocation2 + $0xe8] sm:$0xff] %v759_v21 }
  0xc5   : > { %871 = vst [vmem:[#allocation2 + $0x38] sm:$0xff] %v693_v22 }
  0xca   : > { %v822_v23 = vpop.f32.mrf.mxu3 }
  0xcb   : > { %914 = vst [vmem:[#allocation2 + $0x190] sm:$0xff] %v822_v23  ;;  %v762_v24 = vpop.f32.mrf.mxu2 }
  0xcc   : > { %v696_v25 = vpop.f32.mrf.mxu0  ;;  %894 = vst [vmem:[#allocation2 + $0xf0] sm:$0xff] %v762_v24 }
  0xcd   : > { %872 = vst [vmem:[#allocation2 + $0x40] sm:$0xff] %v696_v25 }
  0xd2   : > { %v825_v26 = vpop.f32.mrf.mxu3 }
  0xd3   : > { %915 = vst [vmem:[#allocation2 + $0x198] sm:$0xff] %v825_v26  ;;  %v765_v27 = vpop.f32.mrf.mxu2 }
  0xd4   : > { %v699_v28 = vpop.f32.mrf.mxu0  ;;  %895 = vst [vmem:[#allocation2 + $0xf8] sm:$0xff] %v765_v27 }
  0xd5   : > { %873 = vst [vmem:[#allocation2 + $0x48] sm:$0xff] %v699_v28 }
  0xda   : > { %v828_v29 = vpop.f32.mrf.mxu3 }
  0xdb   : > { %916 = vst [vmem:[#allocation2 + $0x1a0] sm:$0xff] %v828_v29  ;;  %v768_v30 = vpop.f32.mrf.mxu2 }
  0xdc   : > { %v702_v31 = vpop.f32.mrf.mxu0  ;;  %896 = vst [vmem:[#allocation2 + $0x100] sm:$0xff] %v768_v30 }
  0xdd   : > { %874 = vst [vmem:[#allocation2 + $0x50] sm:$0xff] %v702_v31 }
  0xe2   : > { %v831_v32 = vpop.f32.mrf.mxu3 }
  0xe3   : > { %917 = vst [vmem:[#allocation2 + $0x1a8] sm:$0xff] %v831_v32  ;;  %v771_v33 = vpop.f32.mrf.mxu2 }
  0xe4   : > { %v705_v34 = vpop.f32.mrf.mxu0  ;;  %897 = vst [vmem:[#allocation2 + $0x108] sm:$0xff] %v771_v33 }
  0xe5   : > { %875 = vst [vmem:[#allocation2 + $0x58] sm:$0xff] %v705_v34 }
  0xea   : > { %v834_v35 = vpop.f32.mrf.mxu3 }
  0xeb   : > { %918 = vst [vmem:[#allocation2 + $0x1b0] sm:$0xff] %v834_v35  ;;  %v774_v36 = vpop.f32.mrf.mxu2 }
  0xec   : > { %v708_v37 = vpop.f32.mrf.mxu0  ;;  %898 = vst [vmem:[#allocation2 + $0x110] sm:$0xff] %v774_v36 }
  0xed   : > { %876 = vst [vmem:[#allocation2 + $0x60] sm:$0xff] %v708_v37 }
  0xf2   : > { %v837_v38 = vpop.f32.mrf.mxu3 }
  0xf3   : > { %919 = vst [vmem:[#allocation2 + $0x1b8] sm:$0xff] %v837_v38  ;;  %v777_v39 = vpop.f32.mrf.mxu2 }
  0xf4   : > { %v711_v40 = vpop.f32.mrf.mxu0  ;;  %899 = vst [vmem:[#allocation2 + $0x118] sm:$0xff] %v777_v39 }
  0xf5   : > { %877 = vst [vmem:[#allocation2 + $0x68] sm:$0xff] %v711_v40 }
  0xfa   : > { %v840_v41 = vpop.f32.mrf.mxu3 }
  0xfb   : > { %920 = vst [vmem:[#allocation2 + $0x1c0] sm:$0xff] %v840_v41  ;;  %v780_v42 = vpop.f32.mrf.mxu2 }
  0xfc   : > { %v714_v43 = vpop.f32.mrf.mxu0  ;;  %900 = vst [vmem:[#allocation2 + $0x120] sm:$0xff] %v780_v42 }
  0xfd   : > { %878 = vst [vmem:[#allocation2 + $0x70] sm:$0xff] %v714_v43 }
 0x102   : > { %v843_v44 = vpop.f32.mrf.mxu3 }
 0x103   : > { %921 = vst [vmem:[#allocation2 + $0x1c8] sm:$0xff] %v843_v44  ;;  %v783_v45 = vpop.f32.mrf.mxu2 }
 0x104   : > { %v717_v46 = vpop.f32.mrf.mxu0  ;;  %901 = vst [vmem:[#allocation2 + $0x128] sm:$0xff] %v783_v45 }
 0x105   : > { %879 = vst [vmem:[#allocation2 + $0x78] sm:$0xff] %v717_v46 }
 0x10a   : > { %v846_v47 = vpop.f32.mrf.mxu3 }
 0x10b   : > { %922 = vst [vmem:[#allocation2 + $0x1d0] sm:$0xff] %v846_v47  ;;  %v786_v48 = vpop.f32.mrf.mxu2 }
 0x10c   : > { %v720_v49 = vpop.f32.mrf.mxu0  ;;  %902 = vst [vmem:[#allocation2 + $0x130] sm:$0xff] %v786_v48 }
 0x10d   : > { %880 = vst [vmem:[#allocation2 + $0x80] sm:$0xff] %v720_v49 }
 0x112   : > { %v849_v50 = vpop.f32.mrf.mxu3 }
 0x113   : > { %923 = vst [vmem:[#allocation2 + $0x1d8] sm:$0xff] %v849_v50  ;;  %v789_v51 = vpop.f32.mrf.mxu2 }
 0x114   : > { %v723_v52 = vpop.f32.mrf.mxu0  ;;  %903 = vst [vmem:[#allocation2 + $0x138] sm:$0xff] %v789_v51 }
 0x115   : > { %881 = vst [vmem:[#allocation2 + $0x88] sm:$0xff] %v723_v52 }
 0x11a   : > { %v852_v53 = vpop.f32.mrf.mxu3 }
 0x11b   : > { %924 = vst [vmem:[#allocation2 + $0x1e0] sm:$0xff] %v852_v53  ;;  %v792_v54 = vpop.f32.mrf.mxu2 }
 0x11c   : > { %v726_v55 = vpop.f32.mrf.mxu0  ;;  %904 = vst [vmem:[#allocation2 + $0x140] sm:$0xff] %v792_v54 }
 0x11d   : > { %882 = vst [vmem:[#allocation2 + $0x90] sm:$0xff] %v726_v55 }
 0x122   : > { %v855_v62 = vpop.f32.mrf.mxu3 }
 0x123   : > { %925 = vst [vmem:[#allocation2 + $0x1e8] sm:$0xff] %v855_v62  ;;  %v795_v63 = vpop.f32.mrf.mxu2 }
 0x124   : > { %v729_v0 = vpop.f32.mrf.mxu0  ;;  %905 = vst [vmem:[#allocation2 + $0x148] sm:$0xff] %v795_v63 }
 0x125   : > { %883 = vst [vmem:[#allocation2 + $0x98] sm:$0xff] %v729_v0 }
 0x12a   : > { %v858_v1 = vpop.f32.mrf.mxu3 }
 0x12b   : > { %926 = vst [vmem:[#allocation2 + $0x1f0] sm:$0xff] %v858_v1  ;;  %v798_v2 = vpop.f32.mrf.mxu2 }
 0x12c   : > { %v732_v3 = vpop.f32.mrf.mxu0  ;;  %906 = vst [vmem:[#allocation2 + $0x150] sm:$0xff] %v798_v2 }
 0x12d   : > { %884 = vst [vmem:[#allocation2 + $0xa0] sm:$0xff] %v732_v3 }
 0x132   : > { %v861_v4 = vpop.f32.mrf.mxu3 }
 0x133   : > { %927 = vst [vmem:[#allocation2 + $0x1f8] sm:$0xff] %v861_v4 }
 0x134   : > { %v735_v5 = vpop.f32.mrf.mxu0 }
 0x135   : > { %885 = vst [vmem:[#allocation2 + $0xa8] sm:$0xff] %v735_v5 }
 0x13c   : > { %v738_v6 = vpop.f32.mrf.mxu0 }
 0x13d   : > { %886 = vst [vmem:[#allocation2 + $0xb0] sm:$0xff] %v738_v6 }
 0x13e LB: >> { %s940_s23 = sadd.s32 4294967295, %s1793_s22  ;;  %p1003_p4 = scmp.gt.s32.totalorder %s1793_s22, 0  ;;  %v2051_v7 = vperm.slane %v2015_v56, 0  ;;  %v2057_v8 = vperm.slane %v2020_v57, 0  ;;  %vm974_vm4 = vcmask 1040384   ;;  %v2073_v18 = vperm.slane %v2025_v58, 1  ;;  %s1793_s22 = sphi %s2042_s22, %s2292_s22  }
 0x13f   : >> { %p941_p5 = scmp.gt.s32.totalorder %s940_s23, 0  ;;  %p1679_p6 = scmp.lt.s32.totalorder %s940_s23, 15  ;;  %vm981_vm5 = vcmask 1046528   ;;  %v2077_v21 = vperm.slane %v2025_v58, 0  ;;  %v2082_v24 = vperm.slane %v2025_v58, 2  ;;  %v2087_v27 = vperm.slane %v2025_v58, 4 }
 0x140   : >> { %p963_p7 = scmp.ge.s32.totalorder %s940_s23, 0  ;;  %p964_p8 = scmp.lt.s32.totalorder %s940_s23, 16  ;;  %v2114_v50 = vperm.slane %v2025_v58, 3  ;;  %v2117_v51 = vperm.slane %v2025_v58, 5 }
 0x141   : >> { %s2298_s23 = smov (!%p941_p5, %s940_s23), 0  ;;  %p1686_p10 = scmp.lt.s32.totalorder %s1793_s22, 15 }
 0x142   : >> { %p965_p9 = pnand %p964_p8, %p963_p7  ;;  %s2300_s23 = smov (!%p1679_p6, %s2298_s23), 15 }
 0x143   : >> { %s1684_s26 = sshll.u32 %s2300_s23, 4  ;;  %s2054_s27 = sadd.s32 1, %s1793_s22  }
 0x144   : >> { %s1685_s24 = scalar_select %p965_p9, 0, 1 }
 0x145   : >> { %s946_s30 = scalar_lea.vmem [#allocation2], %s1684_s26  ;;  %p1049_p11 = scmp.gt.s32.totalorder %s2054_s27, 0 }
 0x146   : >> { %s968_s29 = scvt.s32.f32 %s1685_s24  ;;  %v947_v9 = vld [vmem:[%s946_s30] sm:$0xff]  ;;  %v948_v10 = vld [vmem:[%s946_s30 + $0x8] sm:$0xff]  ;;  %p1692_p12 = scmp.lt.s32.totalorder %s2054_s27, 15 }
 0x147   : >> { %s1004_s11 = scalar_select %p1003_p4, %s1793_s22, 0  ;;  %v952_v11 = vadd.f32 %v2051_v7, %v947_v9  ;;  %v953_v12 = vadd.f32 %v2051_v7, %v948_v10 }
 0x148   : >> { %v969_v13 = vstv %s968_s29  ;;  %s1050_s12 = scalar_select %p1049_p11, %s2054_s27, 0 }
 0x149   : >> { %s2302_s11 = smov (!%p1686_p10, %s1004_s11), 15  ;;  %vm954_vm2 = vcmp.ge.f32.partialorder %v952_v11, 0.0  ;;  %vm955_vm3 = vcmp.ge.f32.partialorder %v953_v12, 0.0  ;;  %v959_v14 = vmul.f32 %v2057_v8, %v952_v11  ;;  %v960_v15 = vmul.f32 %v2057_v8, %v953_v12  ;;  %p1065_p13 = scmp.ge.s32.totalorder %s2054_s27, 0 }
 0x14a   : >> { %s1691_s14 = sshll.u32 %s2302_s11, 4  ;;  %p1066_p0 = scmp.lt.s32.totalorder %s2054_s27, 16 }
 0x14b   : >> { %v961_v16 = vsel %vm954_vm2, %v952_v11, %v959_v14  ;;  %v962_v17 = vsel %vm955_vm3, %v953_v12, %v960_v15  ;;  %s1008_s15 = scalar_lea.vmem [#allocation2], %s1691_s14  ;;  %s2304_s12 = smov (!%p1692_p12, %s1050_s12), 15 }
 0x14c   : >> { %v970_v19 = vmul.f32 %v969_v13, %v961_v16  ;;  %v971_v20 = vmul.f32 %v969_v13, %v962_v17  ;;  %v1009_v22 = vld [vmem:[%s1008_s15] sm:$0xff]  ;;  %v1010_v23 = vld [vmem:[%s1008_s15 + $0x8] sm:$0xff]  ;;  %s1697_s16 = sshll.u32 %s2304_s12, 4  ;;  %p2093_p1 = pnand %p1066_p0, %p1065_p13 }
 0x14d   : >> { %v1011_v25 = vadd.f32 %v1009_v22, %v2051_v7  ;;  %v1012_v26 = vadd.f32 %v1010_v23, %v2051_v7  ;;  %s1054_s18 = scalar_lea.vmem [#allocation2], %s1697_s16  ;;  %s1699_s21 = sshll.u32 %s1793_s22, 4 }
 0x14e   : >> { %v975_v28 = vrot.slane %v970_v19, 7  ;;  %v976_v29 = vrot.slane %v971_v20, 7  ;;  %v982_v30 = vrot.slane %v970_v19, 1  ;;  %v983_v31 = vrot.slane %v971_v20, 1  ;;  %v1055_v38 = vld [vmem:[%s1054_s18] sm:$0xff]  ;;  %v1056_v39 = vld [vmem:[%s1054_s18 + $0x8] sm:$0xff]  ;;  %s2292_s22 = smov %s2054_s27 }
 0x14f   : >> { %v994_v32 = vmul.f32 %v2073_v18, %v970_v19  ;;  %v995_v33 = vmul.f32 %v2073_v18, %v971_v20  ;;  %vm1013_vm6 = vcmp.ge.f32.partialorder %v1011_v25, 0.0  ;;  %vm1014_vm7 = vcmp.ge.f32.partialorder %v1012_v26, 0.0  ;;  %s1698_s19 = scalar_select %p2093_p1, 0, 1 }
 0x150   : >> { %v977_v34 = vsel %vm974_vm4, %v975_v28, %v976_v29  ;;  %v980_v35 = vsel %vm974_vm4, 0.0, %v975_v28  ;;  %v984_v36 = vsel %vm981_vm5, %v982_v30, %v983_v31  ;;  %v987_v37 = vsel %vm981_vm5, %v983_v31, 0.0  ;;  %s1118_s23 = scalar_lea.vmem [#allocation3], %s1699_s21  ;;  %p936_p2 = scmp.ge.s32.totalorder %s2054_s27, 16  }
 0x151   : >> { %v989_v40 = vmul.f32 %v2077_v21, %v980_v35  ;;  %v990_v41 = vmul.f32 %v2077_v21, %v977_v34  ;;  %v999_v42 = vmul.f32 %v2082_v24, %v984_v36  ;;  %v1000_v43 = vmul.f32 %v2082_v24, %v987_v37  ;;  %s1070_s20 = scvt.s32.f32 %s1698_s19  ;;  %s2179_s29 = smov (%p936_p2), 0  }
 0x152   : >> { %v1015_v44 = vmul.f32 %v1011_v25, %v2057_v8  ;;  %v1016_v45 = vmul.f32 %v1012_v26, %v2057_v8  ;;  %v1057_v46 = vadd.f32 %v1055_v38, %v2051_v7  ;;  %v1058_v47 = vadd.f32 %v1056_v39, %v2051_v7 }
 0x153   : >> { %v996_v48 = vadd.f32 %v994_v32, %v989_v40  ;;  %v997_v49 = vadd.f32 %v995_v33, %v990_v41  ;;  %v1071_v22 = vstv %s1070_s20  ;;  %v2136_v29 = vperm.slane %v2025_v58, 6 }
 0x154   : >> { %v1017_v52 = vsel %vm1013_vm6, %v1011_v25, %v1015_v44  ;;  %v1018_v53 = vsel %vm1014_vm7, %v1012_v26, %v1016_v45  ;;  %vm1059_vm8 = vcmp.ge.f32.partialorder %v1057_v46, 0.0  ;;  %vm1060_vm9 = vcmp.ge.f32.partialorder %v1058_v47, 0.0 }
 0x155   : >> { %v1001_v54 = vadd.f32 %v999_v42, %v996_v48  ;;  %v1002_v55 = vadd.f32 %v1000_v43, %v997_v49  ;;  %v1021_v62 = vrot.slane %v1017_v52, 7  ;;  %v1022_v63 = vrot.slane %v1018_v53, 7 }
 0x156   : >> { %v1027_v0 = vrot.slane %v1017_v52, 1  ;;  %v1028_v1 = vrot.slane %v1018_v53, 1  ;;  %v1039_v2 = vmul.f32 %v2087_v27, %v1017_v52  ;;  %v1040_v3 = vmul.f32 %v2087_v27, %v1018_v53 }
 0x157   : >> { %v1023_v4 = vsel %vm974_vm4, %v1021_v62, %v1022_v63  ;;  %v1026_v5 = vsel %vm974_vm4, 0.0, %v1021_v62  ;;  %v1061_v6 = vmul.f32 %v1057_v46, %v2057_v8  ;;  %v1062_v9 = vmul.f32 %v1058_v47, %v2057_v8 }
 0x158   : >> { %v1029_v10 = vsel %vm981_vm5, %v1027_v0, %v1028_v1  ;;  %v1032_v11 = vsel %vm981_vm5, %v1028_v1, 0.0  ;;  %v1034_v12 = vmul.f32 %v2114_v50, %v1026_v5  ;;  %v1035_v13 = vmul.f32 %v2114_v50, %v1023_v4 }
 0x159   : >> { %v1044_v14 = vmul.f32 %v2117_v51, %v1029_v10  ;;  %v1063_v15 = vsel %vm1059_vm8, %v1057_v46, %v1061_v6  ;;  %v1064_v16 = vsel %vm1060_vm9, %v1058_v47, %v1062_v9  ;;  %v1045_v20 = vmul.f32 %v2117_v51, %v1032_v11 }
 0x15a   : >> { %v1036_v17 = vadd.f32 %v1034_v12, %v1001_v54  ;;  %v1037_v19 = vadd.f32 %v1035_v13, %v1002_v55  ;;  %v1072_v23 = vmul.f32 %v1071_v22, %v1063_v15  ;;  %v1073_v25 = vmul.f32 %v1071_v22, %v1064_v16  ;;  %v1154_v22 = vld [vmem:[%s2289_s9] sm:$0xf] (%p936_p2) }
 0x15b   : >> { %v2139_v30 = vperm.slane %v2025_v58, 7  ;;  %v2142_v37 = vperm.slane %v2040_v61, 0  ;;  %v2155_v54 = vperm.slane %v2030_v59, 0  ;;  %v2158_v63 = vperm.slane %v2035_v60, 0 }
 0x15c   : >> { %v1041_v26 = vadd.f32 %v1039_v2, %v1036_v17  ;;  %v1042_v28 = vadd.f32 %v1040_v3, %v1037_v19  ;;  %v1076_v31 = vrot.slane %v1072_v23, 7  ;;  %v1077_v32 = vrot.slane %v1073_v25, 7 }
 0x15d   : >> { %v1082_v33 = vrot.slane %v1072_v23, 1  ;;  %v1083_v34 = vrot.slane %v1073_v25, 1  ;;  %v1094_v44 = vmul.f32 %v2139_v30, %v1072_v23  ;;  %v1095_v45 = vmul.f32 %v2139_v30, %v1073_v25 }
 0x15e   : >> { %v1046_v35 = vadd.f32 %v1044_v14, %v1041_v26  ;;  %v1047_v36 = vadd.f32 %v1045_v20, %v1042_v28  ;;  %v1078_v38 = vsel %vm974_vm4, %v1076_v31, %v1077_v32  ;;  %v1081_v39 = vsel %vm974_vm4, 0.0, %v1076_v31 }
 0x15f   : >> { %v1084_v40 = vsel %vm981_vm5, %v1082_v33, %v1083_v34  ;;  %v1087_v41 = vsel %vm981_vm5, %v1083_v34, 0.0  ;;  %v1089_v42 = vmul.f32 %v2136_v29, %v1081_v39  ;;  %v1090_v43 = vmul.f32 %v2136_v29, %v1078_v38 }
 0x160   : >> { %v1099_v48 = vmul.f32 %v2142_v37, %v1084_v40  ;;  %v1100_v49 = vmul.f32 %v2142_v37, %v1087_v41  ;;  %v1799_v26 = vmov (%p936_p2), 0  }
 0x161   : >> { %v1091_v46 = vadd.f32 %v1089_v42, %v1046_v35  ;;  %v1092_v47 = vadd.f32 %v1090_v43, %v1047_v36  ;;  %1773 = vset.pattern.permute.xlu0 (%p936_p2), %v1799_v26  ;;  %v1153_v43 = vld [vmem:[%s2288_s8] sm:$0xf] (%p936_p2) }
 0x162   : > { %1157 = vperm.xlu0 (%p936_p2), %1773, %v1154_v22  }
 0x163   : >> { %v1096_v52 = vadd.f32 %v1094_v44, %v1091_v46  ;;  %v1097_v53 = vadd.f32 %v1095_v45, %v1092_v47  ;;  %v1200_v44 = vld [vmem:[%s1877_s25] sm:$0xff] (%p936_p2) }
 0x164   : > { %1202 = vst [vmem:[#allocation1] ss:$2 sm:$0xff] (%p936_p2), %v1200_v44 }
 0x165   : >> { %v1101_v55 = vadd.f32 %v1099_v48, %v1096_v52  ;;  %v1102_v62 = vadd.f32 %v1100_v49, %v1097_v53 }
 0x167   : >> { %v1106_v0 = vadd.f32 %v2155_v54, %v1101_v55  ;;  %v1107_v1 = vadd.f32 %v2155_v54, %v1102_v62 }
 0x169   : >> { %vm1108_vm10 = vcmp.ge.f32.partialorder %v1106_v0, 0.0  ;;  %vm1109_vm11 = vcmp.ge.f32.partialorder %v1107_v1, 0.0  ;;  %v1113_v2 = vmul.f32 %v2158_v63, %v1106_v0  ;;  %v1114_v3 = vmul.f32 %v2158_v63, %v1107_v1  ;;  %938 = sbr.rel (!%p936_p2) target bundleno = 318 (0x13e), region = 117 }
 0x16b   : >> { %v1115_v4 = vsel %vm1108_vm10, %v1106_v0, %v1113_v2  ;;  %v1116_v5 = vsel %vm1109_vm11, %v1107_v1, %v1114_v3  ;;  %v1204_v48 = vld.sshfl [vmem:[#allocation1 + $0x8] sm:$0xff pattern:$0x75316420] (%p936_p2)  ;;  %v1203_v53 = vld.sshfl [vmem:[#allocation1] sm:$0xff pattern:$0x75316420] (%p936_p2) }
 0x16c   : >> { %1119 = vst [vmem:[%s1118_s23] sm:$0xff] %v1115_v4 }
 0x16d   : >> { %1120 = vst [vmem:[%s1118_s23 + $0x8] sm:$0xff] %v1116_v5 }
 0x174   : > { %v1152_v6 = vld [vmem:[#allocation3 + $0xf8] sm:$0xff]  ;;  %v1151_v10 = vld [vmem:[#allocation3 + $0xf0] sm:$0xff]  ;;  %v1150_v12 = vld [vmem:[#allocation3 + $0xe8] sm:$0xff] }
 0x175   : > { %v1136_v9 = vld [vmem:[#allocation3 + $0x78] sm:$0xff]  ;;  %1180 = vmatpush.xpose.msrb.mxu2 %v1152_v6  ;;  %v1135_v11 = vld [vmem:[#allocation3 + $0x70] sm:$0xff]  ;;  %v1134_v13 = vld [vmem:[#allocation3 + $0x68] sm:$0xff] }
 0x176   : > { %1160 = vmatpush.xpose.msra.mxu1 %v1136_v9  ;;  %v1149_v14 = vld [vmem:[#allocation3 + $0xe0] sm:$0xff]  ;;  %v1148_v16 = vld [vmem:[#allocation3 + $0xd8] sm:$0xff]  ;;  %v1147_v56 = vld [vmem:[#allocation3 + $0xd0] sm:$0xff] }
 0x177   : > { %v1133_v15 = vld [vmem:[#allocation3 + $0x60] sm:$0xff]  ;;  %v1132_v17 = vld [vmem:[#allocation3 + $0x58] sm:$0xff]  ;;  %v1131_v57 = vld [vmem:[#allocation3 + $0x50] sm:$0xff] }
 0x178   : > { %v1146_v58 = vld [vmem:[#allocation3 + $0xc8] sm:$0xff]  ;;  %v1145_v60 = vld [vmem:[#allocation3 + $0xc0] sm:$0xff]  ;;  %v1144_v19 = vld [vmem:[#allocation3 + $0xb8] sm:$0xff] }
 0x179   : > { %1181 = vmatpush.xpose.msrb.mxu2 %v1151_v10  ;;  %v1130_v59 = vld [vmem:[#allocation3 + $0x48] sm:$0xff]  ;;  %v1129_v61 = vld [vmem:[#allocation3 + $0x40] sm:$0xff]  ;;  %v1128_v20 = vld [vmem:[#allocation3 + $0x38] sm:$0xff] }
 0x17a   : > { %1161 = vmatpush.xpose.msra.mxu1 %v1135_v11  ;;  %v1143_v23 = vld [vmem:[#allocation3 + $0xb0] sm:$0xff]  ;;  %v1142_v28 = vld [vmem:[#allocation3 + $0xa8] sm:$0xff]  ;;  %v1141_v32 = vld [vmem:[#allocation3 + $0xa0] sm:$0xff] }
 0x17b   : > { %v1127_v25 = vld [vmem:[#allocation3 + $0x30] sm:$0xff]  ;;  %v1126_v31 = vld [vmem:[#allocation3 + $0x28] sm:$0xff]  ;;  %v1125_v33 = vld [vmem:[#allocation3 + $0x20] sm:$0xff] }
 0x17c   : > { %v1140_v34 = vld [vmem:[#allocation3 + $0x98] sm:$0xff]  ;;  %v1139_v36 = vld [vmem:[#allocation3 + $0x90] sm:$0xff]  ;;  %v1138_v39 = vld [vmem:[#allocation3 + $0x88] sm:$0xff] }
 0x17d   : > { %1182 = vmatpush.xpose.msrb.mxu2 %v1150_v12  ;;  %v1124_v35 = vld [vmem:[#allocation3 + $0x18] sm:$0xff]  ;;  %v1123_v38 = vld [vmem:[#allocation3 + $0x10] sm:$0xff]  ;;  %v1122_v40 = vld [vmem:[#allocation3 + $0x8] sm:$0xff] }
 0x17e   : > { %1162 = vmatpush.xpose.msra.mxu1 %v1134_v13  ;;  %v1137_v41 = vld [vmem:[#allocation3 + $0x80] sm:$0xff] }
 0x17f   : > { %v1121_v42 = vld [vmem:[#allocation3] sm:$0xff] }
 0x181   : > { %1183 = vmatpush.xpose.msrb.mxu2 %v1149_v14 }
 0x182   : > { %1163 = vmatpush.xpose.msra.mxu1 %v1133_v15 }
 0x185   : > { %1184 = vmatpush.xpose.msrb.mxu2 %v1148_v16 }
 0x186   : > { %1164 = vmatpush.xpose.msra.mxu1 %v1132_v17 }
 0x189   : > { %1185 = vmatpush.xpose.msrb.mxu2 %v1147_v56 }
 0x18a   : > { %1165 = vmatpush.xpose.msra.mxu1 %v1131_v57 }
 0x18d   : > { %1186 = vmatpush.xpose.msrb.mxu2 %v1146_v58 }
 0x18e   : > { %1166 = vmatpush.xpose.msra.mxu1 %v1130_v59 }
 0x191   : > { %1187 = vmatpush.xpose.msrb.mxu2 %v1145_v60 }
 0x192   : > { %1167 = vmatpush.xpose.msra.mxu1 %v1129_v61 }
 0x195   : > { %1188 = vmatpush.xpose.msrb.mxu2 %v1144_v19 }
 0x196   : > { %1168 = vmatpush.xpose.msra.mxu1 %v1128_v20 }
 0x199   : > { %1189 = vmatpush.xpose.msrb.mxu2 %v1143_v23 }
 0x19a   : > { %1169 = vmatpush.xpose.msra.mxu1 %v1127_v25 }
 0x19d   : > { %1190 = vmatpush.xpose.msrb.mxu2 %v1142_v28 }
 0x19e   : > { %1170 = vmatpush.xpose.msra.mxu1 %v1126_v31 }
 0x1a1   : > { %1191 = vmatpush.xpose.msrb.mxu2 %v1141_v32 }
 0x1a2   : > { %1171 = vmatpush.xpose.msra.mxu1 %v1125_v33 }
 0x1a5   : > { %1192 = vmatpush.xpose.msrb.mxu2 %v1140_v34 }
 0x1a6   : > { %1172 = vmatpush.xpose.msra.mxu1 %v1124_v35 }
 0x1a9   : > { %1193 = vmatpush.xpose.msrb.mxu2 %v1139_v36 }
 0x1aa   : > { %1173 = vmatpush.xpose.msra.mxu1 %v1123_v38 }
 0x1ad   : > { %1194 = vmatpush.xpose.msrb.mxu2 %v1138_v39 }
 0x1ae   : > { %1174 = vmatpush.xpose.msra.mxu1 %v1122_v40 }
 0x1b1   : > { %1195 = vmatpush.xpose.msrb.mxu2 %v1137_v41 }
 0x1b2   : > { %1175 = vmatpush.xpose.msra.mxu1 %v1121_v42 }
 0x1b4   : > { %1196 = vmatmul.f32.vlgmr.msrb.gmra.mxu2 %v1153_v43 }
 0x1b5   : > { %1176 = vmatmul.f32.vlgmr.msra.gmra.mxu1 %v1153_v43 }
 0x1d4   : > { %v1158_v45 = vpop.permute.xlu0 %1157 }
 0x232   : > { %v1177_v46 = vpop.f32.mrf.mxu1 }
 0x233   : > { %v1178_v49 = vadd.f32 %v1177_v46, %v1158_v45 }
 0x235   : > { %v1207_v62 = vadd.f32 %v1203_v53, %v1178_v49 }
 0x237   : > { %v1197_v47 = vpop.f32.mrf.mxu2 }
 0x238   : > { %v1198_v52 = vadd.f32 %v1197_v47, %v1158_v45 }
 0x23a   : > { %v1208_v55 = vadd.f32 %v1204_v48, %v1198_v52 }
 0x23c   : > { %v1211_v0 = vrot.slane %v1208_v55, 4 }
 0x23e   : > { %v1212_v1 = vsel %vm651_vm0, %v1207_v62, %v1211_v0 }
 0x23f   : > { %1214 = vst [vmem:[%s1882_s28] sm:$0xff] %v1212_v1 }
 0x240 LB: >> { %s1221_s30 = sadd.s32 4294967295, %s1797_s29  ;;  %p1285_p3 = scmp.gt.s32.totalorder %s1797_s29, 0  ;;  %s1797_s29 = sphi %s2179_s29, %s2294_s29  }
 0x241   : >> { %p1222_p4 = scmp.gt.s32.totalorder %s1221_s30, 0  ;;  %p1700_p5 = scmp.lt.s32.totalorder %s1221_s30, 15 }
 0x242   : >> { %p1245_p6 = scmp.ge.s32.totalorder %s1221_s30, 0  ;;  %p1246_p7 = scmp.lt.s32.totalorder %s1221_s30, 16 }
 0x243   : >> { %s2306_s30 = smov (!%p1222_p4, %s1221_s30), 0  ;;  %p1709_p9 = scmp.lt.s32.totalorder %s1797_s29, 15 }
 0x244   : >> { %p1247_p8 = pnand %p1246_p7, %p1245_p6  ;;  %s2308_s30 = smov (!%p1700_p5, %s2306_s30), 15 }
 0x245   : >> { %s1705_s12 = sshll.u32 %s2308_s30, 4  ;;  %s2188_s14 = sadd.s32 1, %s1797_s29  }
 0x246   : >> { %s1708_s11 = scalar_select %p1247_p8, 0, 1 }
 0x247   : >> { %s1550_s16 = scalar_lea.vmem [#allocation2], %s1705_s12  ;;  %p1332_p10 = scmp.gt.s32.totalorder %s2188_s14, 0 }
 0x248   : >> { %s1250_s15 = scvt.s32.f32 %s1708_s11  ;;  %v1706_v2 = vld [vmem:[%s1550_s16 + $0x100] sm:$0xff]  ;;  %v1707_v3 = vld [vmem:[%s1550_s16 + $0x108] sm:$0xff]  ;;  %p1717_p11 = scmp.lt.s32.totalorder %s2188_s14, 15 }
 0x249   : >> { %s1286_s17 = scalar_select %p1285_p3, %s1797_s29, 0  ;;  %v1234_v4 = vadd.f32 %v1706_v2, %v2051_v7  ;;  %v1235_v5 = vadd.f32 %v1707_v3, %v2051_v7 }
 0x24a   : >> { %v1251_v6 = vstv %s1250_s15  ;;  %s1333_s18 = scalar_select %p1332_p10, %s2188_s14, 0 }
 0x24b   : >> { %s2310_s17 = smov (!%p1709_p9, %s1286_s17), 15  ;;  %vm1236_vm12 = vcmp.ge.f32.partialorder %v1234_v4, 0.0  ;;  %vm1237_vm13 = vcmp.ge.f32.partialorder %v1235_v5, 0.0  ;;  %v1241_v9 = vmul.f32 %v1234_v4, %v2057_v8  ;;  %v1242_v10 = vmul.f32 %v1235_v5, %v2057_v8  ;;  %p1349_p12 = scmp.ge.s32.totalorder %s2188_s14, 0 }
 0x24c   : >> { %s1714_s19 = sshll.u32 %s2310_s17, 4  ;;  %p1350_p13 = scmp.lt.s32.totalorder %s2188_s14, 16 }
 0x24d   : >> { %v1243_v11 = vsel %vm1236_vm12, %v1234_v4, %v1241_v9  ;;  %v1244_v12 = vsel %vm1237_vm13, %v1235_v5, %v1242_v10  ;;  %s1553_s20 = scalar_lea.vmem [#allocation2], %s1714_s19  ;;  %s2312_s18 = smov (!%p1717_p11, %s1333_s18), 15 }
 0x24e   : >> { %v1252_v13 = vmul.f32 %v1251_v6, %v1243_v11  ;;  %v1253_v14 = vmul.f32 %v1251_v6, %v1244_v12  ;;  %v1715_v15 = vld [vmem:[%s1553_s20 + $0x100] sm:$0xff]  ;;  %v1716_v16 = vld [vmem:[%s1553_s20 + $0x108] sm:$0xff]  ;;  %s1722_s21 = sshll.u32 %s2312_s18, 4  ;;  %p2212_p0 = pnand %p1350_p13, %p1349_p12 }
 0x24f   : >> { %v1294_v17 = vadd.f32 %v1715_v15, %v2051_v7  ;;  %v1295_v56 = vadd.f32 %v1716_v16, %v2051_v7  ;;  %s1556_s22 = scalar_lea.vmem [#allocation2], %s1722_s21  ;;  %s1726_s27 = sshll.u32 %s1797_s29, 4 }
 0x250   : >> { %v1257_v57 = vrot.slane %v1252_v13, 7  ;;  %v1258_v58 = vrot.slane %v1253_v14, 7  ;;  %v1264_v59 = vrot.slane %v1252_v13, 1  ;;  %v1265_v60 = vrot.slane %v1253_v14, 1  ;;  %v1723_v28 = vld [vmem:[%s1556_s22 + $0x100] sm:$0xff]  ;;  %v1724_v31 = vld [vmem:[%s1556_s22 + $0x108] sm:$0xff]  ;;  %s2294_s29 = smov %s2188_s14 }
 0x251   : >> { %v1276_v61 = vmul.f32 %v1252_v13, %v2073_v18  ;;  %v1277_v19 = vmul.f32 %v1253_v14, %v2073_v18  ;;  %vm1296_vm14 = vcmp.ge.f32.partialorder %v1294_v17, 0.0  ;;  %vm1297_vm15 = vcmp.ge.f32.partialorder %v1295_v56, 0.0  ;;  %s1725_s24 = scalar_select %p2212_p0, 0, 1 }
 0x252   : >> { %v1259_v20 = vsel %vm974_vm4, %v1257_v57, %v1258_v58  ;;  %v1262_v22 = vsel %vm974_vm4, 0.0, %v1257_v57  ;;  %v1266_v23 = vsel %vm981_vm5, %v1264_v59, %v1265_v60  ;;  %v1269_v25 = vsel %vm981_vm5, %v1265_v60, 0.0  ;;  %s1402_s30 = scalar_lea.vmem [#allocation3], %s1726_s27  ;;  %p1217_p1 = scmp.ge.s32.totalorder %s2188_s14, 16  }
 0x253   : >> { %v1271_v32 = vmul.f32 %v1262_v22, %v2077_v21  ;;  %v1272_v33 = vmul.f32 %v1259_v20, %v2077_v21  ;;  %v1281_v34 = vmul.f32 %v1266_v23, %v2082_v24  ;;  %v1282_v35 = vmul.f32 %v1269_v25, %v2082_v24  ;;  %s1354_s26 = scvt.s32.f32 %s1725_s24  ;;  %1774 = vset.pattern.permute.xlu0 (%p1217_p1), %v1799_v26 }
 0x254   : >> { %v1298_v36 = vmul.f32 %v1294_v17, %v2057_v8  ;;  %v1299_v38 = vmul.f32 %v1295_v56, %v2057_v8  ;;  %v1341_v39 = vadd.f32 %v1723_v28, %v2051_v7  ;;  %v1342_v40 = vadd.f32 %v1724_v31, %v2051_v7 }
 0x255   : >> { %v1278_v41 = vadd.f32 %v1276_v61, %v1271_v32  ;;  %v1279_v42 = vadd.f32 %v1277_v19, %v1272_v33  ;;  %v1355_v15 = vstv %s1354_s26 }
 0x256   : >> { %v1300_v43 = vsel %vm1296_vm14, %v1294_v17, %v1298_v36  ;;  %v1301_v44 = vsel %vm1297_vm15, %v1295_v56, %v1299_v38  ;;  %vm1343_vm1 = vcmp.ge.f32.partialorder %v1341_v39, 0.0  ;;  %vm1344_vm2 = vcmp.ge.f32.partialorder %v1342_v40, 0.0 }
 0x257   : >> { %v1283_v45 = vadd.f32 %v1281_v34, %v1278_v41  ;;  %v1284_v46 = vadd.f32 %v1282_v35, %v1279_v42  ;;  %v1304_v47 = vrot.slane %v1300_v43, 7  ;;  %v1305_v48 = vrot.slane %v1301_v44, 7 }
 0x258   : >> { %v1310_v49 = vrot.slane %v1300_v43, 1  ;;  %v1311_v52 = vrot.slane %v1301_v44, 1  ;;  %v1322_v53 = vmul.f32 %v1300_v43, %v2087_v27  ;;  %v1323_v55 = vmul.f32 %v1301_v44, %v2087_v27 }
 0x259   : >> { %v1306_v62 = vsel %vm974_vm4, %v1304_v47, %v1305_v48  ;;  %v1309_v0 = vsel %vm974_vm4, 0.0, %v1304_v47  ;;  %v1345_v1 = vmul.f32 %v1341_v39, %v2057_v8  ;;  %v1346_v2 = vmul.f32 %v1342_v40, %v2057_v8 }
 0x25a   : >> { %v1312_v3 = vsel %vm981_vm5, %v1310_v49, %v1311_v52  ;;  %v1315_v4 = vsel %vm981_vm5, %v1311_v52, 0.0  ;;  %v1317_v5 = vmul.f32 %v1309_v0, %v2114_v50  ;;  %v1318_v6 = vmul.f32 %v1306_v62, %v2114_v50 }
 0x25b   : >> { %v1327_v9 = vmul.f32 %v1312_v3, %v2117_v51  ;;  %v1347_v10 = vsel %vm1343_vm1, %v1341_v39, %v1345_v1  ;;  %v1348_v11 = vsel %vm1344_vm2, %v1342_v40, %v1346_v2  ;;  %v1328_v14 = vmul.f32 %v1315_v4, %v2117_v51 }
 0x25c   : >> { %v1319_v12 = vadd.f32 %v1317_v5, %v1283_v45  ;;  %v1320_v13 = vadd.f32 %v1318_v6, %v1284_v46  ;;  %v1356_v16 = vmul.f32 %v1355_v15, %v1347_v10  ;;  %v1357_v17 = vmul.f32 %v1355_v15, %v1348_v11 }
 0x25e   : >> { %v1324_v56 = vadd.f32 %v1322_v53, %v1319_v12  ;;  %v1325_v57 = vadd.f32 %v1323_v55, %v1320_v13  ;;  %v1360_v58 = vrot.slane %v1356_v16, 7  ;;  %v1361_v59 = vrot.slane %v1357_v17, 7 }
 0x25f   : >> { %v1366_v60 = vrot.slane %v1356_v16, 1  ;;  %v1367_v61 = vrot.slane %v1357_v17, 1  ;;  %v1378_v33 = vmul.f32 %v1356_v16, %v2139_v30  ;;  %v1379_v34 = vmul.f32 %v1357_v17, %v2139_v30  ;;  %v1437_v17 = vld [vmem:[%s2288_s8] sm:$0xf] (%p1217_p1) }
 0x260   : >> { %v1329_v19 = vadd.f32 %v1327_v9, %v1324_v56  ;;  %v1330_v20 = vadd.f32 %v1328_v14, %v1325_v57  ;;  %v1362_v22 = vsel %vm974_vm4, %v1360_v58, %v1361_v59  ;;  %v1365_v23 = vsel %vm974_vm4, 0.0, %v1360_v58  ;;  %v1727_v56 = vld [vmem:[%s1877_s25 + $0x8] sm:$0xff] (%p1217_p1) }
 0x261   : >> { %v1368_v25 = vsel %vm981_vm5, %v1366_v60, %v1367_v61  ;;  %v1371_v28 = vsel %vm981_vm5, %v1367_v61, 0.0  ;;  %v1373_v31 = vmul.f32 %v1365_v23, %v2136_v29  ;;  %v1374_v32 = vmul.f32 %v1362_v22, %v2136_v29  ;;  %v1438_v29 = vld [vmem:[%s2289_s9] sm:$0xf] (%p1217_p1)  ;;  %1487 = vst [vmem:[#allocation1] ss:$2 sm:$0xff] (%p1217_p1), %v1727_v56 }
 0x262   : >> { %v1383_v38 = vmul.f32 %v1368_v25, %v2142_v37  ;;  %v1384_v39 = vmul.f32 %v1371_v28, %v2142_v37  ;;  %1441 = vperm.xlu0 (%p1217_p1), %1774, %v1438_v29  }
 0x263   : >> { %v1375_v35 = vadd.f32 %v1373_v31, %v1329_v19  ;;  %v1376_v36 = vadd.f32 %v1374_v32, %v1330_v20 }
 0x265   : >> { %v1380_v40 = vadd.f32 %v1378_v33, %v1375_v35  ;;  %v1381_v41 = vadd.f32 %v1379_v34, %v1376_v36 }
 0x267   : >> { %v1385_v42 = vadd.f32 %v1383_v38, %v1380_v40  ;;  %v1386_v43 = vadd.f32 %v1384_v39, %v1381_v41 }
 0x268   : > { %v1489_v59 = vld.sshfl [vmem:[#allocation1 + $0x8] sm:$0xff pattern:$0x75316420] (%p1217_p1)  ;;  %v1488_v20 = vld.sshfl [vmem:[#allocation1] sm:$0xff pattern:$0x75316420] (%p1217_p1) }
 0x269   : >> { %v1390_v44 = vadd.f32 %v1385_v42, %v2155_v54  ;;  %v1391_v45 = vadd.f32 %v1386_v43, %v2155_v54 }
 0x26b   : >> { %vm1392_vm3 = vcmp.ge.f32.partialorder %v1390_v44, 0.0  ;;  %vm1393_vm6 = vcmp.ge.f32.partialorder %v1391_v45, 0.0  ;;  %v1397_v46 = vmul.f32 %v1390_v44, %v2158_v63  ;;  %v1398_v47 = vmul.f32 %v1391_v45, %v2158_v63  ;;  %1219 = sbr.rel (!%p1217_p1) target bundleno = 576 (0x240), region = 128 }
 0x26d   : >> { %v1399_v48 = vsel %vm1392_vm3, %v1390_v44, %v1397_v46  ;;  %v1400_v49 = vsel %vm1393_vm6, %v1391_v45, %v1398_v47 }
 0x26e   : >> { %1403 = vst [vmem:[%s1402_s30] sm:$0xff] %v1399_v48 }
 0x26f   : >> { %1404 = vst [vmem:[%s1402_s30 + $0x8] sm:$0xff] %v1400_v49 }
 0x276   : > { %v1420_v52 = vld [vmem:[#allocation3 + $0x78] sm:$0xff]  ;;  %v1419_v55 = vld [vmem:[#allocation3 + $0x70] sm:$0xff]  ;;  %v1418_v0 = vld [vmem:[#allocation3 + $0x68] sm:$0xff] }
 0x277   : > { %v1436_v53 = vld [vmem:[#allocation3 + $0xf8] sm:$0xff]  ;;  %1444 = vmatpush.xpose.msrb.mxu3 %v1420_v52  ;;  %v1435_v62 = vld [vmem:[#allocation3 + $0xf0] sm:$0xff]  ;;  %v1434_v1 = vld [vmem:[#allocation3 + $0xe8] sm:$0xff] }
 0x278   : > { %1464 = vmatpush.xpose.msrb.mxu1 %v1436_v53  ;;  %v1417_v2 = vld [vmem:[#allocation3 + $0x60] sm:$0xff]  ;;  %v1416_v4 = vld [vmem:[#allocation3 + $0x58] sm:$0xff]  ;;  %v1415_v7 = vld [vmem:[#allocation3 + $0x50] sm:$0xff] }
 0x279   : > { %v1433_v3 = vld [vmem:[#allocation3 + $0xe0] sm:$0xff]  ;;  %v1432_v5 = vld [vmem:[#allocation3 + $0xd8] sm:$0xff]  ;;  %v1431_v8 = vld [vmem:[#allocation3 + $0xd0] sm:$0xff] }
 0x27a   : > { %v1414_v18 = vld [vmem:[#allocation3 + $0x48] sm:$0xff]  ;;  %v1413_v24 = vld [vmem:[#allocation3 + $0x40] sm:$0xff]  ;;  %v1412_v50 = vld [vmem:[#allocation3 + $0x38] sm:$0xff] }
 0x27b   : > { %1445 = vmatpush.xpose.msrb.mxu3 %v1419_v55  ;;  %v1430_v21 = vld [vmem:[#allocation3 + $0xc8] sm:$0xff]  ;;  %v1429_v27 = vld [vmem:[#allocation3 + $0xc0] sm:$0xff]  ;;  %v1428_v51 = vld [vmem:[#allocation3 + $0xb8] sm:$0xff] }
 0x27c   : > { %1465 = vmatpush.xpose.msrb.mxu1 %v1435_v62  ;;  %v1411_v30 = vld [vmem:[#allocation3 + $0x30] sm:$0xff]  ;;  %v1410_v54 = vld [vmem:[#allocation3 + $0x28] sm:$0xff]  ;;  %v1409_v26 = vld [vmem:[#allocation3 + $0x20] sm:$0xff] }
 0x27d   : > { %v1427_v37 = vld [vmem:[#allocation3 + $0xb0] sm:$0xff]  ;;  %v1426_v63 = vld [vmem:[#allocation3 + $0xa8] sm:$0xff]  ;;  %v1425_v6 = vld [vmem:[#allocation3 + $0xa0] sm:$0xff] }
 0x27e   : > { %v1408_v9 = vld [vmem:[#allocation3 + $0x18] sm:$0xff]  ;;  %v1407_v11 = vld [vmem:[#allocation3 + $0x10] sm:$0xff]  ;;  %v1406_v13 = vld [vmem:[#allocation3 + $0x8] sm:$0xff] }
 0x27f   : > { %1446 = vmatpush.xpose.msrb.mxu3 %v1418_v0  ;;  %v1424_v10 = vld [vmem:[#allocation3 + $0x98] sm:$0xff]  ;;  %v1423_v12 = vld [vmem:[#allocation3 + $0x90] sm:$0xff]  ;;  %v1422_v14 = vld [vmem:[#allocation3 + $0x88] sm:$0xff] }
 0x280   : > { %1466 = vmatpush.xpose.msrb.mxu1 %v1434_v1  ;;  %v1405_v15 = vld [vmem:[#allocation3] sm:$0xff] }
 0x281   : > { %v1421_v16 = vld [vmem:[#allocation3 + $0x80] sm:$0xff] }
 0x283   : > { %1447 = vmatpush.xpose.msrb.mxu3 %v1417_v2 }
 0x284   : > { %1467 = vmatpush.xpose.msrb.mxu1 %v1433_v3 }
 0x287   : > { %1448 = vmatpush.xpose.msrb.mxu3 %v1416_v4 }
 0x288   : > { %1468 = vmatpush.xpose.msrb.mxu1 %v1432_v5 }
 0x28b   : > { %1449 = vmatpush.xpose.msrb.mxu3 %v1415_v7 }
 0x28c   : > { %1469 = vmatpush.xpose.msrb.mxu1 %v1431_v8 }
 0x28f   : > { %1450 = vmatpush.xpose.msrb.mxu3 %v1414_v18 }
 0x290   : > { %1470 = vmatpush.xpose.msrb.mxu1 %v1430_v21 }
 0x293   : > { %1451 = vmatpush.xpose.msrb.mxu3 %v1413_v24 }
 0x294   : > { %1471 = vmatpush.xpose.msrb.mxu1 %v1429_v27 }
 0x297   : > { %1452 = vmatpush.xpose.msrb.mxu3 %v1412_v50 }
 0x298   : > { %1472 = vmatpush.xpose.msrb.mxu1 %v1428_v51 }
 0x29b   : > { %1453 = vmatpush.xpose.msrb.mxu3 %v1411_v30 }
 0x29c   : > { %1473 = vmatpush.xpose.msrb.mxu1 %v1427_v37 }
 0x29f   : > { %1454 = vmatpush.xpose.msrb.mxu3 %v1410_v54 }
 0x2a0   : > { %1474 = vmatpush.xpose.msrb.mxu1 %v1426_v63 }
 0x2a3   : > { %1455 = vmatpush.xpose.msrb.mxu3 %v1409_v26 }
 0x2a4   : > { %1475 = vmatpush.xpose.msrb.mxu1 %v1425_v6 }
 0x2a7   : > { %1456 = vmatpush.xpose.msrb.mxu3 %v1408_v9 }
 0x2a8   : > { %1476 = vmatpush.xpose.msrb.mxu1 %v1424_v10 }
 0x2ab   : > { %1457 = vmatpush.xpose.msrb.mxu3 %v1407_v11 }
 0x2ac   : > { %1477 = vmatpush.xpose.msrb.mxu1 %v1423_v12 }
 0x2af   : > { %1458 = vmatpush.xpose.msrb.mxu3 %v1406_v13 }
 0x2b0   : > { %1478 = vmatpush.xpose.msrb.mxu1 %v1422_v14 }
 0x2b3   : > { %1459 = vmatpush.xpose.msrb.mxu3 %v1405_v15 }
 0x2b4   : > { %1479 = vmatpush.xpose.msrb.mxu1 %v1421_v16 }
 0x2b6   : > { %1460 = vmatmul.f32.vlgmr.msrb.gmra.mxu3 %v1437_v17 }
 0x2b7   : > { %1480 = vmatmul.f32.vlgmr.msrb.gmra.mxu1 %v1437_v17 }
 0x2d4   : > { %v1442_v57 = vpop.permute.xlu0 %1441 }
 0x334   : > { %v1481_v58 = vpop.f32.mrf.mxu1 }
 0x335   : > { %v1482_v60 = vadd.f32 %v1481_v58, %v1442_v57 }
 0x337   : > { %v1493_v61 = vadd.f32 %v1489_v59, %v1482_v60 }
 0x339   : > { %v1461_v19 = vpop.f32.mrf.mxu3  ;;  %v1496_v22 = vrot.slane %v1493_v61, 4 }
 0x33a   : > { %v1462_v23 = vadd.f32 %v1461_v19, %v1442_v57 }
 0x33c   : > { %v1492_v25 = vadd.f32 %v1488_v20, %v1462_v23 }
 0x33e   : > { %v1497_v28 = vsel %vm651_vm0, %v1492_v25, %v1496_v22 }
 0x33f   : > { %1728 = vst [vmem:[%s1882_s28 + $0x8] sm:$0xff] %v1497_v28 }
 0x340 PF: > { %s20_s13 = sadd.s32 1, %s1789_s13  }
 0x341   : > { %p17_p2 = scmp.ge.s32.totalorder %s20_s13, 4  }
 0x343   :  { %19 = sbr.rel (!%p17_p2) target bundleno = 1 (0x1), region = 139 }

</bundles_post_ra>
